<compile_context>
chip_gen: v5e
topology: v5e:2x2
jax: 0.10.0
libtpu: 0.0.40
codegen_flags: <defaults>
</compile_context>

<pallas_src>
import jax
import jax.numpy as jnp
from jax.experimental import pallas as pl
from jax.experimental.pallas import tpu as pltpu

_LANE = 128  # lane width; also the batch packing quantum for the lane-dense output


def _round_up(n, m):
    return ((n + m - 1) // m) * m


def _choose_tiling(batch, block_rows):
    """Pad the batch to the 128-row packing quantum and pick a tile that divides it."""
    b_padded = _round_up(max(batch, 1), _LANE)
    m = b_padded // _LANE                       # number of 128-row packing blocks
    cap = max(1, block_rows // _LANE)
    if m >= 2:
        # Guarantee >= 2 grid steps so both v7x TensorCores get a share of the batch.
        cap = max(1, min(cap, m // 2))
    d = 1
    for c in range(min(cap, m), 0, -1):         # largest divisor of m that is <= cap
        if m % c == 0:
            d = c
            break
    return b_padded, d * _LANE, m // d


def price_predictor_kernel(x_ref,
                           w1_ref, b1_ref,
                           w2_ref, b2_ref,
                           w3_ref, b3_ref,
                           w4_ref, b4_ref,
                           w5_ref, b5_ref,
                           o_ref):
    def fused_layer(h, w_ref, b_ref):
        # MXU matmul with f32 accumulation, then bf16 bias-add + LeakyReLU(0.2) epilogue.
        acc = jnp.dot(h, w_ref[...], preferred_element_type=jnp.float32)
        a = acc.astype(jnp.bfloat16) + b_ref[...]
        return jnp.where(a > 0, a, 0.2 * a)

    h = x_ref[...]                        # (tile_b, F)  bf16
    h = fused_layer(h, w1_ref, b1_ref)    # (tile_b, 256)  [BN folded] + LeakyReLU
    h = fused_layer(h, w2_ref, b2_ref)    # (tile_b, 128)
    h = fused_layer(h, w3_ref, b3_ref)    # (tile_b, 64)
    h = fused_layer(h, w4_ref, b4_ref)    # (tile_b, 32)

    # Last layer, lane-packed: logits[0, j] = sum_k w5[0, k] * h[j, k].
    # NT matmul (the q@k^T pattern) — the MXU moves the batch dim into lanes for free.
    logits = jax.lax.dot_general(
        w5_ref[...], h, (((1,), (1,)), ((), ())),
        preferred_element_type=jnp.float32)          # (8, tile_b); only row 0 is real
    row = logits[0:1, :] + b5_ref[0, 0]              # (1, tile_b) f32, bias from SMEM
    o_ref[...] = jax.nn.sigmoid(row).reshape(o_ref.shape)


def make_raw_params(input_size, key):
    """Deterministic synthetic parameters mirroring the torch module (eval mode)."""
    eps = 1e-5
    dims = [input_size, 256, 128, 64, 32, 1]
    layers = []
    for i in range(5):
        cin, cout = dims[i], dims[i + 1]
        key, kg, kb, km, kv, kw, kbias = jax.random.split(key, 7)
        gamma = 1.0 + 0.1 * jax.random.normal(kg, (cin,), jnp.float32)
        beta = 0.1 * jax.random.normal(kb, (cin,), jnp.float32)
        mean = 0.1 * jax.random.normal(km, (cin,), jnp.float32)
        var = jnp.abs(1.0 + 0.1 * jax.random.normal(kv, (cin,), jnp.float32))
        bound = 1.0 / jnp.sqrt(jnp.float32(cin))
        w = jax.random.uniform(kw, (cin, cout), jnp.float32, -bound, bound)  # [in, out]
        b = jax.random.uniform(kbias, (cout,), jnp.float32, -bound, bound)
        layers.append(dict(gamma=gamma, beta=beta, mean=mean, var=var, eps=eps, w=w, b=b))
    return layers


def fold_params(layers):
    """Fold eval-mode BN into the following Linear.

    Returns the flat kernel-arg list [W1, b1, ..., W5_row, b5_scalar]:
      * layers 1..4:  W [in, out] bf16, b [1, out] bf16 (bf16 epilogue)
      * layer 5:      W^T as an (8, 32) bf16 row block (row 0 real, rows 1..7 zero)
                      so the NT matmul emits lane-packed logits; bias as (1, 1) f32
                      destined for SMEM.
    """
    kernel_params = []
    n = len(layers)
    for i, L in enumerate(layers):
        scale = L["gamma"] / jnp.sqrt(L["var"] + L["eps"])
        shift = L["beta"] - L["mean"] * scale
        w = scale[:, None] * L["w"]                      # diag(scale) @ W
        b = shift[None, :] @ L["w"] + L["b"][None, :]    # shift @ W + b
        if i < n - 1:
            kernel_params += [w.astype(jnp.bfloat16), b.astype(jnp.bfloat16)]
        else:
            w_row = jnp.zeros((8, w.shape[0]), jnp.float32).at[0].set(w[:, 0])
            kernel_params += [w_row.astype(jnp.bfloat16),
                              b.reshape(1, 1).astype(jnp.float32)]
    return kernel_params


def price_predictor_forward(x, kernel_params, *, block_rows=2048):
    """Fused forward pass.  block_rows=2048 keeps live VMEM at a few MiB (safe on v7x's
    64 MiB); v6e could go 4096-8192 if desired."""
    B, F = x.shape
    # bf16 input stream (same MXU numerics as casting inside the kernel).
    x = x.astype(jnp.bfloat16)

    b_padded, tile_b, num_steps = _choose_tiling(B, block_rows)
    if b_padded != B:
        x = jnp.pad(x, ((0, b_padded - B), (0, 0)))

    in_specs = [pl.BlockSpec((tile_b, F), lambda i: (i, 0))]
    for p in kernel_params[:-1]:
        # Full-shape blocks with a constant index_map: parameters stay VMEM-resident
        # across grid steps (revisited block, no re-DMA).
        in_specs.append(pl.BlockSpec(p.shape, lambda i: (0, 0)))
    # Final bias is a single scalar -> SMEM.
    in_specs.append(pl.BlockSpec(memory_space=pltpu.MemorySpace.SMEM))

    # Lane-dense packed output: one (1, tile_b) row of sigmoids per grid step.
    out_specs = pl.BlockSpec((1, 1, tile_b), lambda i: (i, 0, 0))
    out_shape = jax.ShapeDtypeStruct((num_steps, 1, tile_b), jnp.float32)

    layer_dims = [(F, 256), (256, 128), (128, 64), (64, 32), (32, 8)]
    flops = int(2 * b_padded * sum(ci * co for ci, co in layer_dims))
    bytes_accessed = int(
        b_padded * F * 2                                   # bf16 x stream in
        + b_padded * 4                                     # packed f32 output
        + sum(int(p.size) * p.dtype.itemsize for p in kernel_params))
    cost = pl.CostEstimate(flops=flops,
                           transcendentals=int(b_padded),  # one sigmoid per row
                           bytes_accessed=bytes_accessed)

    out = pl.pallas_call(
        price_predictor_kernel,
        out_shape=out_shape,
        grid=(num_steps,),
        in_specs=in_specs,
        out_specs=out_specs,
        compiler_params=pltpu.CompilerParams(
            dimension_semantics=("parallel",),
            vmem_limit_bytes=32 * 1024 * 1024),
        cost_estimate=cost,
    )(x, *kernel_params)

    # (num_steps, 1, tile_b) row-major == batch order; drop padded rows.
    return out.reshape(-1, 1)[:B]


def reference_forward_kernel_math(x, kernel_params):
    """Pure-JAX reference mirroring the kernel's math (bf16 MXU inputs + bf16 epilogue)."""
    w1, b1, w2, b2, w3, b3, w4, b4, w5, b5 = kernel_params
    h = x.astype(jnp.bfloat16)
    for w, b in ((w1, b1), (w2, b2), (w3, b3), (w4, b4)):
        a = jnp.dot(h, w, preferred_element_type=jnp.float32).astype(jnp.bfloat16) + b
        h = jnp.where(a > 0, a, 0.2 * a)
    logits = jax.lax.dot_general(
        w5, h, (((1,), (1,)), ((), ())),
        preferred_element_type=jnp.float32)[0:1, :] + b5[0, 0]
    return jax.nn.sigmoid(logits).T                      # (B, 1)


def reference_forward_f32(x, layers):
    """Pure-f32 reference of the original module semantics (un-folded BN, eval mode)."""
    h = x.astype(jnp.float32)
    n = len(layers)
    for i, L in enumerate(layers):
        scale = L["gamma"] / jnp.sqrt(L["var"] + L["eps"])
        shift = L["beta"] - L["mean"] * scale
        h = h * scale[None, :] + shift[None, :]
        h = h @ L["w"] + L["b"][None, :]
        if i < n - 1:
            h = jnp.where(h > 0, h, 0.2 * h)
    return jax.nn.sigmoid(h)


if __name__ == "__main__":
    input_size = 32
    batch = 8

    key = jax.random.PRNGKey(0)
    key, kx = jax.random.split(key)
    x = jax.random.normal(kx, (batch, input_size), jnp.float32)

    layers = make_raw_params(input_size, key)
    kernel_params = fold_params(layers)

    out = jax.block_until_ready(price_predictor_forward(x, kernel_params))
    assert out.shape == (batch, 1), out.shape

    # Structural check: same math (bf16 MXU inputs, f32 accumulation, bf16 epilogue).
    ref_exact = reference_forward_kernel_math(x, kernel_params)
    assert jnp.allclose(out, ref_exact, atol=2e-3, rtol=2e-3), (out, ref_exact)

    # Semantics check vs. the full-f32 un-folded module (bf16 tolerance).
    ref_f32 = reference_forward_f32(x, layers)
    assert jnp.allclose(out, ref_f32, atol=3e-2, rtol=3e-2), (out, ref_f32)

    print("KERNEL_OK")
</pallas_src>

<mosaic_0001>
module attributes {stable_mosaic.version = 11 : i64} {
  func.func @price_predictor_kernel(%arg0: i32, %arg1: memref<128x32xbf16, #tpu.memory_space<vmem>>, %arg2: memref<32x256xbf16, #tpu.memory_space<vmem>>, %arg3: memref<1x256xbf16, #tpu.memory_space<vmem>>, %arg4: memref<256x128xbf16, #tpu.memory_space<vmem>>, %arg5: memref<1x128xbf16, #tpu.memory_space<vmem>>, %arg6: memref<128x64xbf16, #tpu.memory_space<vmem>>, %arg7: memref<1x64xbf16, #tpu.memory_space<vmem>>, %arg8: memref<64x32xbf16, #tpu.memory_space<vmem>>, %arg9: memref<1x32xbf16, #tpu.memory_space<vmem>>, %arg10: memref<8x32xbf16, #tpu.memory_space<vmem>>, %arg11: memref<1x1xf32, #tpu.memory_space<smem>>, %arg12: memref<1x1x128xf32, #tpu.memory_space<vmem>>) attributes {dimension_semantics = [#tpu.dimension_semantics<parallel>], iteration_bounds = array<i64: 1>, scalar_prefetch = 0 : i64, scratch_operands = 0 : i64, tpu.core_type = #tpu.core_type<tc>, window_params = [{transform_indices = @transform_0, window_bounds = array<i64: 128, 32>}, {pipeline_mode = #tpu.pipeline_mode<synchronous>, transform_indices = @transform_1, window_bounds = array<i64: 32, 256>}, {pipeline_mode = #tpu.pipeline_mode<synchronous>, transform_indices = @transform_2, window_bounds = array<i64: 1, 256>}, {pipeline_mode = #tpu.pipeline_mode<synchronous>, transform_indices = @transform_3, window_bounds = array<i64: 256, 128>}, {pipeline_mode = #tpu.pipeline_mode<synchronous>, transform_indices = @transform_4, window_bounds = array<i64: 1, 128>}, {pipeline_mode = #tpu.pipeline_mode<synchronous>, transform_indices = @transform_5, window_bounds = array<i64: 128, 64>}, {pipeline_mode = #tpu.pipeline_mode<synchronous>, transform_indices = @transform_6, window_bounds = array<i64: 1, 64>}, {pipeline_mode = #tpu.pipeline_mode<synchronous>, transform_indices = @transform_7, window_bounds = array<i64: 64, 32>}, {pipeline_mode = #tpu.pipeline_mode<synchronous>, transform_indices = @transform_8, window_bounds = array<i64: 1, 32>}, {pipeline_mode = #tpu.pipeline_mode<synchronous>, transform_indices = @transform_9, window_bounds = array<i64: 8, 32>}, {transform_indices = @transform_10, window_bounds = array<i64: 1, 1>}, {transform_indices = @transform_11, window_bounds = array<i64: 1, 1, 128>}]} {
    %c0 = arith.constant 0 : index
    %c0_0 = arith.constant 0 : index
    %0 = vector.load %arg1[%c0, %c0_0] : memref<128x32xbf16, #tpu.memory_space<vmem>>, vector<128x32xbf16>
    %c0_1 = arith.constant 0 : index
    %c0_2 = arith.constant 0 : index
    %1 = vector.load %arg2[%c0_1, %c0_2] : memref<32x256xbf16, #tpu.memory_space<vmem>>, vector<32x256xbf16>
    %cst = arith.constant dense<0.000000e+00> : vector<128x256xf32>
    %2 = tpu.matmul %0, %1, %cst {dimension_numbers = #tpu.dot_dimension_numbers<[1], [0], [0], [1], [0, 0, 1, 1], [], []>} : vector<128x32xbf16>, vector<32x256xbf16>, vector<128x256xf32> -> vector<128x256xf32>
    %3 = arith.truncf %2 : vector<128x256xf32> to vector<128x256xbf16>
    %c0_3 = arith.constant 0 : index
    %c0_4 = arith.constant 0 : index
    %4 = vector.load %arg3[%c0_3, %c0_4] : memref<1x256xbf16, #tpu.memory_space<vmem>>, vector<1x256xbf16>
    %5 = vector.broadcast %4 : vector<1x256xbf16> to vector<128x256xbf16>
    %6 = arith.addf %3, %5 : vector<128x256xbf16>
    %cst_5 = arith.constant 0.000000e+00 : bf16
    %7 = vector.broadcast %cst_5 : bf16 to vector<128x256xbf16>
    %8 = arith.cmpf ogt, %6, %7 : vector<128x256xbf16>
    %cst_6 = arith.constant 2.001950e-01 : bf16
    %9 = vector.broadcast %cst_6 : bf16 to vector<128x256xbf16>
    %10 = arith.mulf %9, %6 : vector<128x256xbf16>
    %11 = arith.select %8, %6, %10 : vector<128x256xi1>, vector<128x256xbf16>
    %c0_7 = arith.constant 0 : index
    %c0_8 = arith.constant 0 : index
    %12 = vector.load %arg4[%c0_7, %c0_8] : memref<256x128xbf16, #tpu.memory_space<vmem>>, vector<256x128xbf16>
    %cst_9 = arith.constant dense<0.000000e+00> : vector<128x128xf32>
    %13 = tpu.matmul %11, %12, %cst_9 {dimension_numbers = #tpu.dot_dimension_numbers<[1], [0], [0], [1], [0, 0, 1, 1], [], []>} : vector<128x256xbf16>, vector<256x128xbf16>, vector<128x128xf32> -> vector<128x128xf32>
    %14 = arith.truncf %13 : vector<128x128xf32> to vector<128x128xbf16>
    %c0_10 = arith.constant 0 : index
    %c0_11 = arith.constant 0 : index
    %15 = vector.load %arg5[%c0_10, %c0_11] : memref<1x128xbf16, #tpu.memory_space<vmem>>, vector<1x128xbf16>
    %16 = vector.broadcast %15 : vector<1x128xbf16> to vector<128x128xbf16>
    %17 = arith.addf %14, %16 : vector<128x128xbf16>
    %cst_12 = arith.constant 0.000000e+00 : bf16
    %18 = vector.broadcast %cst_12 : bf16 to vector<128x128xbf16>
    %19 = arith.cmpf ogt, %17, %18 : vector<128x128xbf16>
    %cst_13 = arith.constant 2.001950e-01 : bf16
    %20 = vector.broadcast %cst_13 : bf16 to vector<128x128xbf16>
    %21 = arith.mulf %20, %17 : vector<128x128xbf16>
    %22 = arith.select %19, %17, %21 : vector<128x128xi1>, vector<128x128xbf16>
    %c0_14 = arith.constant 0 : index
    %c0_15 = arith.constant 0 : index
    %23 = vector.load %arg6[%c0_14, %c0_15] : memref<128x64xbf16, #tpu.memory_space<vmem>>, vector<128x64xbf16>
    %cst_16 = arith.constant dense<0.000000e+00> : vector<128x64xf32>
    %24 = tpu.matmul %22, %23, %cst_16 {dimension_numbers = #tpu.dot_dimension_numbers<[1], [0], [0], [1], [0, 0, 1, 1], [], []>} : vector<128x128xbf16>, vector<128x64xbf16>, vector<128x64xf32> -> vector<128x64xf32>
    %25 = arith.truncf %24 : vector<128x64xf32> to vector<128x64xbf16>
    %c0_17 = arith.constant 0 : index
    %c0_18 = arith.constant 0 : index
    %26 = vector.load %arg7[%c0_17, %c0_18] : memref<1x64xbf16, #tpu.memory_space<vmem>>, vector<1x64xbf16>
    %27 = vector.broadcast %26 : vector<1x64xbf16> to vector<128x64xbf16>
    %28 = arith.addf %25, %27 : vector<128x64xbf16>
    %cst_19 = arith.constant 0.000000e+00 : bf16
    %29 = vector.broadcast %cst_19 : bf16 to vector<128x64xbf16>
    %30 = arith.cmpf ogt, %28, %29 : vector<128x64xbf16>
    %cst_20 = arith.constant 2.001950e-01 : bf16
    %31 = vector.broadcast %cst_20 : bf16 to vector<128x64xbf16>
    %32 = arith.mulf %31, %28 : vector<128x64xbf16>
    %33 = arith.select %30, %28, %32 : vector<128x64xi1>, vector<128x64xbf16>
    %c0_21 = arith.constant 0 : index
    %c0_22 = arith.constant 0 : index
    %34 = vector.load %arg8[%c0_21, %c0_22] : memref<64x32xbf16, #tpu.memory_space<vmem>>, vector<64x32xbf16>
    %cst_23 = arith.constant dense<0.000000e+00> : vector<128x32xf32>
    %35 = tpu.matmul %33, %34, %cst_23 {dimension_numbers = #tpu.dot_dimension_numbers<[1], [0], [0], [1], [0, 0, 1, 1], [], []>} : vector<128x64xbf16>, vector<64x32xbf16>, vector<128x32xf32> -> vector<128x32xf32>
    %36 = arith.truncf %35 : vector<128x32xf32> to vector<128x32xbf16>
    %c0_24 = arith.constant 0 : index
    %c0_25 = arith.constant 0 : index
    %37 = vector.load %arg9[%c0_24, %c0_25] : memref<1x32xbf16, #tpu.memory_space<vmem>>, vector<1x32xbf16>
    %38 = vector.broadcast %37 : vector<1x32xbf16> to vector<128x32xbf16>
    %39 = arith.addf %36, %38 : vector<128x32xbf16>
    %cst_26 = arith.constant 0.000000e+00 : bf16
    %40 = vector.broadcast %cst_26 : bf16 to vector<128x32xbf16>
    %41 = arith.cmpf ogt, %39, %40 : vector<128x32xbf16>
    %cst_27 = arith.constant 2.001950e-01 : bf16
    %42 = vector.broadcast %cst_27 : bf16 to vector<128x32xbf16>
    %43 = arith.mulf %42, %39 : vector<128x32xbf16>
    %44 = arith.select %41, %39, %43 : vector<128x32xi1>, vector<128x32xbf16>
    %c0_28 = arith.constant 0 : index
    %c0_29 = arith.constant 0 : index
    %45 = vector.load %arg10[%c0_28, %c0_29] : memref<8x32xbf16, #tpu.memory_space<vmem>>, vector<8x32xbf16>
    %cst_30 = arith.constant dense<0.000000e+00> : vector<8x128xf32>
    %46 = tpu.matmul %45, %44, %cst_30 {dimension_numbers = #tpu.dot_dimension_numbers<[1], [1], [0], [0], [0, 0, 1, 0], [], []>} : vector<8x32xbf16>, vector<128x32xbf16>, vector<8x128xf32> -> vector<8x128xf32>
    %47 = vector.extract_strided_slice %46 {offsets = [0, 0], sizes = [1, 128], strides = [1, 1]} : vector<8x128xf32> to vector<1x128xf32>
    %c0_31 = arith.constant 0 : index
    %c0_32 = arith.constant 0 : index
    %48 = memref.load %arg11[%c0_31, %c0_32] : memref<1x1xf32, #tpu.memory_space<smem>>
    %49 = vector.broadcast %48 : f32 to vector<1x128xf32>
    %50 = arith.addf %47, %49 : vector<1x128xf32>
    %51 = arith.negf %50 : vector<1x128xf32>
    %52 = math.exp %51 : vector<1x128xf32>
    %cst_33 = arith.constant 1.000000e+00 : f32
    %53 = vector.broadcast %cst_33 : f32 to vector<1x128xf32>
    %54 = arith.addf %53, %52 : vector<1x128xf32>
    %55 = arith.divf %53, %54 : vector<1x128xf32>
    %56 = vector.shape_cast %55 : vector<1x128xf32> to vector<1x1x128xf32>
    %c0_34 = arith.constant 0 : index
    %c0_35 = arith.constant 0 : index
    %c0_36 = arith.constant 0 : index
    %57 = vector.load %arg12[%c0_34, %c0_35, %c0_36] : memref<1x1x128xf32, #tpu.memory_space<vmem>>, vector<1x1x128xf32>
    tpu.vector_store %arg12[%c0_34, %c0_35, %c0_36], %56 {strides = array<i32>} : memref<1x1x128xf32, #tpu.memory_space<vmem>>, vector<1x1x128xf32>,
    return
  }
  func.func @transform_0(%arg0: i32) -> (i32, i32) {
    %c0_i32 = arith.constant 0 : i32
    %c0_i32_0 = arith.constant 0 : i32
    return %arg0, %c0_i32 : i32, i32
  }
  func.func @transform_1(%arg0: i32) -> (i32, i32) {
    %c0_i32 = arith.constant 0 : i32
    %c0_i32_0 = arith.constant 0 : i32
    %c0_i32_1 = arith.constant 0 : i32
    return %c0_i32, %c0_i32_0 : i32, i32
  }
  func.func @transform_2(%arg0: i32) -> (i32, i32) {
    %c0_i32 = arith.constant 0 : i32
    %c0_i32_0 = arith.constant 0 : i32
    %c0_i32_1 = arith.constant 0 : i32
    return %c0_i32, %c0_i32_0 : i32, i32
  }
  func.func @transform_3(%arg0: i32) -> (i32, i32) {
    %c0_i32 = arith.constant 0 : i32
    %c0_i32_0 = arith.constant 0 : i32
    %c0_i32_1 = arith.constant 0 : i32
    return %c0_i32, %c0_i32_0 : i32, i32
  }
  func.func @transform_4(%arg0: i32) -> (i32, i32) {
    %c0_i32 = arith.constant 0 : i32
    %c0_i32_0 = arith.constant 0 : i32
    %c0_i32_1 = arith.constant 0 : i32
    return %c0_i32, %c0_i32_0 : i32, i32
  }
  func.func @transform_5(%arg0: i32) -> (i32, i32) {
    %c0_i32 = arith.constant 0 : i32
    %c0_i32_0 = arith.constant 0 : i32
    %c0_i32_1 = arith.constant 0 : i32
    return %c0_i32, %c0_i32_0 : i32, i32
  }
  func.func @transform_6(%arg0: i32) -> (i32, i32) {
    %c0_i32 = arith.constant 0 : i32
    %c0_i32_0 = arith.constant 0 : i32
    %c0_i32_1 = arith.constant 0 : i32
    return %c0_i32, %c0_i32_0 : i32, i32
  }
  func.func @transform_7(%arg0: i32) -> (i32, i32) {
    %c0_i32 = arith.constant 0 : i32
    %c0_i32_0 = arith.constant 0 : i32
    %c0_i32_1 = arith.constant 0 : i32
    return %c0_i32, %c0_i32_0 : i32, i32
  }
  func.func @transform_8(%arg0: i32) -> (i32, i32) {
    %c0_i32 = arith.constant 0 : i32
    %c0_i32_0 = arith.constant 0 : i32
    %c0_i32_1 = arith.constant 0 : i32
    return %c0_i32, %c0_i32_0 : i32, i32
  }
  func.func @transform_9(%arg0: i32) -> (i32, i32) {
    %c0_i32 = arith.constant 0 : i32
    %c0_i32_0 = arith.constant 0 : i32
    %c0_i32_1 = arith.constant 0 : i32
    return %c0_i32, %c0_i32_0 : i32, i32
  }
  func.func @transform_10(%arg0: i32) -> (i32, i32) {
    %c0_i32 = arith.constant 0 : i32
    %c0_i32_0 = arith.constant 0 : i32
    %c0_i32_1 = arith.constant 0 : i32
    return %c0_i32, %c0_i32_0 : i32, i32
  }
  func.func @transform_11(%arg0: i32) -> (i32, i32, i32) {
    %c0_i32 = arith.constant 0 : i32
    %c0_i32_0 = arith.constant 0 : i32
    %c0_i32_1 = arith.constant 0 : i32
    return %arg0, %c0_i32, %c0_i32_0 : i32, i32, i32
  }
}

</mosaic_0001>

<bundles_post_ra>
// kernel: tpu_custom_call.1
= control target key start
LH: loop header
LB: loop body
LE: loop exit
PB: predicated region body
PF: predicated region fallthrough
CT: control target
= control target key end

     0   :  { %s2407_s0 = inlined_call_operand.vmem [shape: bf16[128,32], index: 0, kind: input, shape index: {}]   ;;  %s2408_s1 = inlined_call_operand.vmem [shape: bf16[32,256], index: 1, kind: input, shape index: {}]   ;;  %s2409_s2 = inlined_call_operand.vmem [shape: bf16[1,256], index: 2, kind: input, shape index: {}]   ;;  %s2410_s3 = inlined_call_operand.vmem [shape: bf16[256,128], index: 3, kind: input, shape index: {}]   ;;  %s2411_s4 = inlined_call_operand.vmem [shape: bf16[1,128], index: 4, kind: input, shape index: {}]   ;;  %s2412_s5 = inlined_call_operand.vmem [shape: bf16[128,64], index: 5, kind: input, shape index: {}]   ;;  %s2413_s6 = inlined_call_operand.vmem [shape: bf16[1,64], index: 6, kind: input, shape index: {}]   ;;  %s2414_s7 = inlined_call_operand.vmem [shape: bf16[64,32], index: 7, kind: input, shape index: {}]   ;;  %s2415_s8 = inlined_call_operand.vmem [shape: bf16[1,32], index: 8, kind: input, shape index: {}]   ;;  %s2416_s9 = inlined_call_operand.vmem [shape: bf16[8,32], index: 9, kind: input, shape index: {}]   ;;  %s2417_s10 = inlined_call_operand.<no memory space> [shape: f32[1,1], index: 10, kind: input, shape index: {}]   ;;  %s2418_s11 = inlined_call_operand.hbm [shape: f32[1,1,128], index: 11, kind: output, shape index: {}]  }
   0x1   :  { %v1770_v0 = vld [vmem:[%s2408_s1 + $0x10] sm:$0xf]  ;;  %v1925_v1 = vld [vmem:[%s2408_s1 + $0x14] sm:$0xf0]  ;;  %v1924_v2 = vld [vmem:[%s2408_s1 + $0x14] sm:$0xf] }
   0x2   :  { %v1771_v3 = vor.u32 %v1925_v1, %v1770_v0  ;;  %v1772_v4 = vld [vmem:[%s2408_s1 + $0x18] sm:$0xf0]  ;;  %v1762_v5 = vld [vmem:[%s2408_s1] sm:$0xf]  ;;  %v1923_v6 = vld [vmem:[%s2408_s1 + $0x4] sm:$0xf0] }
   0x3   :  { %v1775_v7 = vor.u32 %v1924_v2, %v1772_v4  ;;  %v1922_v8 = vld [vmem:[%s2408_s1 + $0x4] sm:$0xf]  ;;  %v1764_v9 = vld [vmem:[%s2408_s1 + $0x8] sm:$0xf0]  ;;  %v1763_v10 = vor.u32 %v1923_v6, %v1762_v5 }
   0x4   :  { %152 = vmatpush.bf16.msra.mxu0 %v1771_v3  ;;  %1954 = vmatpush.bf16.msra.mxu3 %v1771_v3 }
   0x5   :  { %17 = vsyncpa [#allocation4], 0  ;;  %201 = vmatpush.bf16.msra.mxu1 %v1775_v7  ;;  %v1767_v11 = vor.u32 %v1922_v8, %v1764_v9  ;;  %1956 = vmatpush.bf16.msra.mxu2 %v1775_v7  ;;  %v1914_v12 = vld [vmem:[%s2407_s0] sm:$0xff]  ;;  %vm121_vm0 = vcmask 261120   ;;  %v1915_v13 = vld [vmem:[%s2407_s0 + $0x8] sm:$0xff] }
   0x6   :  { %v1919_v14 = vld [vmem:[%s2407_s0 + $0x28] sm:$0xff]  ;;  %v1916_v15 = vld [vmem:[%s2407_s0 + $0x10] sm:$0xff]  ;;  %v1933_v17 = vld [vmem:[%s2410_s3 + $0x38] sm:$0xff] }
   0x7   :  { %v1920_v16 = vld [vmem:[%s2407_s0 + $0x30] sm:$0xff]  ;;  %v1941_v18 = vld [vmem:[%s2410_s3 + $0x78] sm:$0xff]  ;;  %v1918_v21 = vld [vmem:[%s2407_s0 + $0x20] sm:$0xff] }
   0x8   :  { %153 = vmatpush.bf16.msra.mxu0 %v1763_v10  ;;  %1955 = vmatpush.bf16.msra.mxu3 %v1763_v10  ;;  %v1917_v19 = vld [vmem:[%s2407_s0 + $0x18] sm:$0xff]  ;;  %v260_v22 = vld [vmem:[%s2409_s2] sm:$0x3]  ;;  %v1932_v23 = vld [vmem:[%s2410_s3 + $0x30] sm:$0xff] }
   0x9   :  { %202 = vmatpush.bf16.msra.mxu1 %v1767_v11  ;;  %1957 = vmatpush.bf16.msra.mxu2 %v1767_v11  ;;  %v1921_v20 = vld [vmem:[%s2407_s0 + $0x38] sm:$0xff]  ;;  %262 = vst [vmem:[#allocation1] ss:$9 sm:$0xff] %v260_v22  ;;  %v1940_v24 = vld [vmem:[%s2410_s3 + $0x70] sm:$0xff]  ;;  %v1931_v25 = vld [vmem:[%s2410_s3 + $0x28] sm:$0xff] }
   0xa   :  { %v1939_v26 = vld [vmem:[%s2410_s3 + $0x68] sm:$0xff]  ;;  %v1930_v27 = vld [vmem:[%s2410_s3 + $0x20] sm:$0xff]  ;;  %v1929_v29 = vld [vmem:[%s2410_s3 + $0x18] sm:$0xff] }
   0xb   :  { %1776 = vmatmul.msk.bf16.vlgmr.msra.gmra.mxu0 %vm121_vm0, %v1914_v12  ;;  %1781 = vmatmul.msk.bf16.vlgmr.msra.gmra.mxu3 %vm121_vm0, %v1919_v14  ;;  %v1938_v28 = vld [vmem:[%s2410_s3 + $0x60] sm:$0xff]  ;;  %v1937_v30 = vld [vmem:[%s2410_s3 + $0x58] sm:$0xff]  ;;  %v1928_v31 = vld [vmem:[%s2410_s3 + $0x10] sm:$0xff] }
   0xc   :  { %1784 = vmatmul.msk.bf16.vlgmr.msra.gmra.mxu1 %vm121_vm0, %v1914_v12  ;;  %1789 = vmatmul.msk.bf16.vlgmr.msra.gmra.mxu2 %vm121_vm0, %v1919_v14  ;;  %v1936_v32 = vld [vmem:[%s2410_s3 + $0x50] sm:$0xff]  ;;  %v1927_v33 = vld [vmem:[%s2410_s3 + $0x8] sm:$0xff]  ;;  %v1926_v37 = vld [vmem:[%s2410_s3] sm:$0xff] }
   0xd   :  { %705 = vmatpush.bf16.msrb.mxu2 %v1933_v17  ;;  %754 = vmatpush.bf16.msrb.mxu3 %v1941_v18  ;;  %v1935_v34 = vld [vmem:[%s2410_s3 + $0x48] sm:$0xff]  ;;  %v1934_v38 = vld [vmem:[%s2410_s3 + $0x40] sm:$0xff] }
  0x10   :  { %v263_v35 = vld [vmem:[#allocation1] sm:$0xff]  ;;  %v264_v36 = vld [vmem:[#allocation1 + $0x9] sm:$0xff] }
  0x11   :  { %706 = vmatpush.bf16.msrb.mxu2 %v1932_v23  ;;  %755 = vmatpush.bf16.msrb.mxu3 %v1940_v24  ;;  %v265_v39 = vpack.i.b16 %v263_v35, %v263_v35  ;;  %v268_v40 = vpack.i.b16 %v264_v36, %v264_v36 }
  0x13   :  { %v267_v41 = vperm.slane %v265_v39, 0  ;;  %v270_v42 = vperm.slane %v268_v40, 0 }
  0x15   :  { %707 = vmatpush.bf16.msrb.mxu2 %v1931_v25  ;;  %756 = vmatpush.bf16.msrb.mxu3 %v1939_v26  ;;  %v2165_v46 = vunpack.c.l.bf16 %v267_v41  ;;  %v2167_v47 = vunpack.c.l.bf16 %v270_v42 }
  0x19   :  { %708 = vmatpush.bf16.msrb.mxu2 %v1930_v27  ;;  %757 = vmatpush.bf16.msrb.mxu3 %v1938_v28 }
  0x1b   :  { %1777 = vmatmul.msk.bf16.gmra.mxu0 %vm121_vm0, %v1915_v13  ;;  %1782 = vmatmul.msk.bf16.gmra.mxu3 %vm121_vm0, %v1920_v16 }
  0x1c   :  { %1785 = vmatmul.msk.bf16.gmra.mxu1 %vm121_vm0, %v1915_v13  ;;  %1790 = vmatmul.msk.bf16.gmra.mxu2 %vm121_vm0, %v1920_v16 }
  0x1d   :  { %709 = vmatpush.bf16.msrb.mxu2 %v1929_v29  ;;  %758 = vmatpush.bf16.msrb.mxu3 %v1937_v30 }
  0x21   :  { %710 = vmatpush.bf16.msrb.mxu2 %v1928_v31  ;;  %759 = vmatpush.bf16.msrb.mxu3 %v1936_v32 }
  0x25   :  { %711 = vmatpush.bf16.msrb.mxu2 %v1927_v33  ;;  %760 = vmatpush.bf16.msrb.mxu3 %v1935_v34 }
  0x29   :  { %712 = vmatpush.bf16.msrb.mxu2 %v1926_v37  ;;  %761 = vmatpush.bf16.msrb.mxu3 %v1934_v38 }
  0x2b   :  { %1778 = vmatmul.msk.bf16.gmra.mxu0 %vm121_vm0, %v1916_v15  ;;  %1783 = vmatmul.msk.bf16.gmra.mxu3 %vm121_vm0, %v1921_v20 }
  0x2c   :  { %1786 = vmatmul.msk.bf16.gmra.mxu1 %vm121_vm0, %v1916_v15  ;;  %1791 = vmatmul.msk.bf16.gmra.mxu2 %vm121_vm0, %v1921_v20 }
  0x3b   :  { %1779 = vmatmul.msk.bf16.gmra.mxu0 %vm121_vm0, %v1917_v19 }
  0x3c   :  { %1787 = vmatmul.msk.bf16.gmra.mxu1 %vm121_vm0, %v1917_v19 }
  0x4b   :  { %1780 = vmatmul.msk.bf16.gmra.mxu0 %vm121_vm0, %v1918_v21 }
  0x4c   :  { %1788 = vmatmul.msk.bf16.gmra.mxu1 %vm121_vm0, %v1918_v21 }
  0x88   :  { %v155_v43 = vpop.f32.mrf.mxu0 }
  0x89   :  { %v204_v44 = vpop.f32.mrf.mxu1 }
  0x8a   :  { %v244_v45 = vpack.c.bf16 %v204_v44, %v155_v43 }
  0x8c   :  { %v271_v48 = vunpack.c.l.bf16 %v244_v45  ;;  %v272_v49 = vunpack.c.h.bf16 %v244_v45 }
  0x8e   :  { %v305_v50 = vadd.f32 %v2165_v46, %v271_v48  ;;  %v306_v51 = vadd.f32 %v2167_v47, %v272_v49 }
  0x90   :  { %v337_v52 = vpack.c.bf16 %v306_v51, %v305_v50  ;;  %v157_v53 = vpop.f32.mrf.mxu0 }
  0x91   :  { %v206_v54 = vpop.f32.mrf.mxu1 }
  0x92   :  { %v353_v55 = vunpack.c.l.bf16 %v337_v52  ;;  %v354_v56 = vunpack.c.h.bf16 %v337_v52  ;;  %v245_v57 = vpack.c.bf16 %v206_v54, %v157_v53 }
  0x94   :  { %v273_v58 = vunpack.c.l.bf16 %v245_v57  ;;  %v274_v59 = vunpack.c.h.bf16 %v245_v57  ;;  %v417_v60 = vmul.f32 0.20019531, %v353_v55  ;;  %v418_v61 = vmul.f32 0.20019531, %v354_v56 }
  0x95   :  { %vm2173_vm1 = vcmp.gt.f32.partialorder %v353_v55, 0.0  ;;  %vm386_vm2 = vcmp.gt.f32.partialorder %v354_v56, 0.0 }
  0x96   :  { %v307_v62 = vadd.f32 %v2165_v46, %v273_v58  ;;  %v308_v63 = vadd.f32 %v2167_v47, %v274_v59  ;;  %v449_v7 = vpack.c.bf16 %v418_v61, %v417_v60  ;;  %vm465_vm5 = vmpackc.low %vm386_vm2, %vm2173_vm1 }
  0x98   :  { %v338_v0 = vpack.c.bf16 %v308_v63, %v307_v62  ;;  %v160_v1 = vpop.f32.mrf.mxu0  ;;  %v481_v14 = vsel %vm465_vm5, %v337_v52, %v449_v7 }
  0x99   :  { %v209_v2 = vpop.f32.mrf.mxu1  ;;  %v545_v20 = vunpack.c.l.b16 %v481_v14  ;;  %v546_v21 = vunpack.c.h.b16 %v481_v14 }
  0x9a   :  { %v246_v4 = vpack.c.bf16 %v209_v2, %v160_v1  ;;  %v355_v5 = vunpack.c.l.bf16 %v338_v0  ;;  %v356_v6 = vunpack.c.h.bf16 %v338_v0 }
  0x9c   :  { %v275_v8 = vunpack.c.l.bf16 %v246_v4  ;;  %v276_v9 = vunpack.c.h.bf16 %v246_v4  ;;  %vm387_vm3 = vcmp.gt.f32.partialorder %v355_v5, 0.0  ;;  %vm388_vm4 = vcmp.gt.f32.partialorder %v356_v6, 0.0 }
  0x9d   :  { %v419_v10 = vmul.f32 0.20019531, %v355_v5  ;;  %v420_v11 = vmul.f32 0.20019531, %v356_v6  ;;  %vm466_vm6 = vmpackc.low %vm388_vm4, %vm387_vm3 }
  0x9e   :  { %v309_v12 = vadd.f32 %v2165_v46, %v275_v8  ;;  %v310_v13 = vadd.f32 %v2167_v47, %v276_v9 }
  0x9f   :  { %v450_v15 = vpack.c.bf16 %v420_v11, %v419_v10 }
  0xa0   :  { %v339_v16 = vpack.c.bf16 %v310_v13, %v309_v12  ;;  %v162_v17 = vpop.f32.mrf.mxu0 }
  0xa1   :  { %v211_v18 = vpop.f32.mrf.mxu1  ;;  %v482_v19 = vsel %vm466_vm6, %v338_v0, %v450_v15 }
  0xa2   :  { %v247_v22 = vpack.c.bf16 %v211_v18, %v162_v17  ;;  %v547_v23 = vunpack.c.l.b16 %v482_v19  ;;  %v548_v24 = vunpack.c.h.b16 %v482_v19  ;;  %v357_v25 = vunpack.c.l.bf16 %v339_v16  ;;  %v180_v17 = vpop.f32.mrf.mxu3  ;;  %v229_v18 = vpop.f32.mrf.mxu2 }
  0xa3   :  { %v358_v26 = vunpack.c.h.bf16 %v339_v16 }
  0xa4   :  { %v277_v27 = vunpack.c.l.bf16 %v247_v22  ;;  %v278_v28 = vunpack.c.h.bf16 %v247_v22  ;;  %v577_v29 = vpack.c.b16 %v547_v23, %v545_v20  ;;  %v578_v30 = vpack.c.b16 %v548_v24, %v546_v21 }
  0xa5   :  { %v421_v33 = vmul.f32 0.20019531, %v357_v25  ;;  %v422_v34 = vmul.f32 0.20019531, %v358_v26  ;;  %vm2183_vm7 = vcmp.gt.f32.partialorder %v357_v25, 0.0  ;;  %vm390_vm8 = vcmp.gt.f32.partialorder %v358_v26, 0.0 }
  0xa6   :  { %v311_v31 = vadd.f32 %v2165_v46, %v277_v27  ;;  %v312_v32 = vadd.f32 %v2167_v47, %v278_v28  ;;  %713 = vmatmul.bf16.vlgmr.msrb.gmra.mxu2 %v577_v29  ;;  %762 = vmatmul.bf16.vlgmr.msrb.gmra.mxu3 %v578_v30  ;;  %vm467_vm11 = vmpackc.low %vm390_vm8, %vm2183_vm7 }
  0xa7   :  { %v451_v42 = vpack.c.bf16 %v422_v34, %v421_v33 }
  0xa8   :  { %v340_v35 = vpack.c.bf16 %v312_v32, %v311_v31  ;;  %v165_v36 = vpop.f32.mrf.mxu0 }
  0xa9   :  { %v214_v37 = vpop.f32.mrf.mxu1  ;;  %v483_v51 = vsel %vm467_vm11, %v339_v16, %v451_v42 }
  0xaa   :  { %v248_v39 = vpack.c.bf16 %v214_v37, %v165_v36  ;;  %v359_v40 = vunpack.c.l.bf16 %v340_v35  ;;  %v360_v41 = vunpack.c.h.bf16 %v340_v35  ;;  %v549_v57 = vunpack.c.l.b16 %v483_v51  ;;  %v182_v42 = vpop.f32.mrf.mxu3 }
  0xab   :  { %v550_v58 = vunpack.c.h.b16 %v483_v51 }
  0xac   :  { %v279_v43 = vunpack.c.l.bf16 %v248_v39  ;;  %v280_v44 = vunpack.c.h.bf16 %v248_v39  ;;  %vm391_vm9 = vcmp.gt.f32.partialorder %v359_v40, 0.0  ;;  %vm392_vm10 = vcmp.gt.f32.partialorder %v360_v41, 0.0 }
  0xad   :  { %v423_v45 = vmul.f32 0.20019531, %v359_v40  ;;  %v424_v48 = vmul.f32 0.20019531, %v360_v41  ;;  %vm468_vm12 = vmpackc.low %vm392_vm10, %vm391_vm9 }
  0xae   :  { %v313_v49 = vadd.f32 %v2165_v46, %v279_v43  ;;  %v314_v50 = vadd.f32 %v2167_v47, %v280_v44  ;;  %v231_v43 = vpop.f32.mrf.mxu2 }
  0xaf   :  { %v452_v52 = vpack.c.bf16 %v424_v48, %v423_v45 }
  0xb0   :  { %v341_v53 = vpack.c.bf16 %v314_v50, %v313_v49  ;;  %v167_v54 = vpop.f32.mrf.mxu0 }
  0xb1   :  { %v216_v55 = vpop.f32.mrf.mxu1  ;;  %v484_v56 = vsel %vm468_vm12, %v340_v35, %v452_v52 }
  0xb2   :  { %v249_v59 = vpack.c.bf16 %v216_v55, %v167_v54  ;;  %v551_v60 = vunpack.c.l.b16 %v484_v56  ;;  %v552_v61 = vunpack.c.h.b16 %v484_v56  ;;  %v361_v62 = vunpack.c.l.bf16 %v341_v53 }
  0xb3   :  { %v362_v63 = vunpack.c.h.bf16 %v341_v53 }
  0xb4   :  { %v281_v0 = vunpack.c.l.bf16 %v249_v59  ;;  %v282_v1 = vunpack.c.h.bf16 %v249_v59  ;;  %v579_v2 = vpack.c.b16 %v551_v60, %v549_v57  ;;  %v580_v3 = vpack.c.b16 %v552_v61, %v550_v58 }
  0xb5   :  { %v425_v6 = vmul.f32 0.20019531, %v361_v62  ;;  %v426_v7 = vmul.f32 0.20019531, %v362_v63  ;;  %vm2193_vm13 = vcmp.gt.f32.partialorder %v361_v62, 0.0  ;;  %vm2197_vm14 = vcmp.gt.f32.partialorder %v362_v63, 0.0 }
  0xb6   :  { %v315_v4 = vadd.f32 %v2165_v46, %v281_v0  ;;  %v316_v5 = vadd.f32 %v2167_v47, %v282_v1  ;;  %718 = vmatmul.bf16.gmra.mxu2 %v579_v2  ;;  %767 = vmatmul.bf16.gmra.mxu3 %v580_v3  ;;  %vm469_vm2 = vmpackc.low %vm2197_vm14, %vm2193_vm13  ;;  %v254_v61 = vpack.c.bf16 %v229_v18, %v180_v17 }
  0xb7   :  { %v453_v16 = vpack.c.bf16 %v426_v7, %v425_v6  ;;  %v185_v7 = vpop.f32.mrf.mxu3 }
  0xb8   :  { %v342_v8 = vpack.c.bf16 %v316_v5, %v315_v4  ;;  %v170_v9 = vpop.f32.mrf.mxu0  ;;  %v255_v5 = vpack.c.bf16 %v231_v43, %v182_v42  ;;  %v291_v11 = vunpack.c.l.bf16 %v254_v61 }
  0xb9   :  { %v219_v10 = vpop.f32.mrf.mxu1  ;;  %v485_v25 = vsel %vm469_vm2, %v341_v53, %v453_v16 }
  0xba   :  { %v250_v13 = vpack.c.bf16 %v219_v10, %v170_v9  ;;  %v363_v14 = vunpack.c.l.bf16 %v342_v8  ;;  %v364_v15 = vunpack.c.h.bf16 %v342_v8  ;;  %v553_v31 = vunpack.c.l.b16 %v485_v25 }
  0xbb   :  { %v554_v32 = vunpack.c.h.b16 %v485_v25 }
  0xbc   :  { %v283_v19 = vunpack.c.l.bf16 %v250_v13  ;;  %v284_v20 = vunpack.c.h.bf16 %v250_v13  ;;  %vm395_vm15 = vcmp.gt.f32.partialorder %v363_v14, 0.0  ;;  %vm396_vm1 = vcmp.gt.f32.partialorder %v364_v15, 0.0 }
  0xbd   :  { %v427_v21 = vmul.f32 0.20019531, %v363_v14  ;;  %v428_v22 = vmul.f32 0.20019531, %v364_v15  ;;  %vm470_vm3 = vmpackc.low %vm396_vm1, %vm395_vm15 }
  0xbe   :  { %v317_v23 = vadd.f32 %v2165_v46, %v283_v19  ;;  %v318_v24 = vadd.f32 %v2167_v47, %v284_v20  ;;  %v292_v20 = vunpack.c.h.bf16 %v254_v61 }
  0xbf   :  { %v454_v26 = vpack.c.bf16 %v428_v22, %v427_v21  ;;  %v293_v21 = vunpack.c.l.bf16 %v255_v5  ;;  %v294_v22 = vunpack.c.h.bf16 %v255_v5 }
  0xc0   :  { %v343_v27 = vpack.c.bf16 %v318_v24, %v317_v23  ;;  %v172_v28 = vpop.f32.mrf.mxu0 }
  0xc1   :  { %v221_v29 = vpop.f32.mrf.mxu1  ;;  %v486_v30 = vsel %vm470_vm3, %v342_v8, %v454_v26  ;;  %v234_v8 = vpop.f32.mrf.mxu2 }
  0xc2   :  { %v251_v33 = vpack.c.bf16 %v221_v29, %v172_v28  ;;  %v555_v34 = vunpack.c.l.b16 %v486_v30  ;;  %v556_v35 = vunpack.c.h.b16 %v486_v30  ;;  %v365_v36 = vunpack.c.l.bf16 %v343_v27 }
  0xc3   :  { %v366_v37 = vunpack.c.h.bf16 %v343_v27 }
  0xc4   :  { %v285_v38 = vunpack.c.l.bf16 %v251_v33  ;;  %v286_v39 = vunpack.c.h.bf16 %v251_v33  ;;  %v581_v40 = vpack.c.b16 %v555_v34, %v553_v31  ;;  %v582_v41 = vpack.c.b16 %v556_v35, %v554_v32 }
  0xc5   :  { %v429_v48 = vmul.f32 0.20019531, %v365_v36  ;;  %v430_v49 = vmul.f32 0.20019531, %v366_v37  ;;  %vm2209_vm4 = vcmp.gt.f32.partialorder %v365_v36, 0.0  ;;  %vm2213_vm5 = vcmp.gt.f32.partialorder %v366_v37, 0.0  ;;  %v187_v37 = vpop.f32.mrf.mxu3 }
  0xc6   :  { %v319_v44 = vadd.f32 %v2165_v46, %v285_v38  ;;  %v320_v45 = vadd.f32 %v2167_v47, %v286_v39  ;;  %723 = vmatmul.bf16.gmra.mxu2 %v581_v40  ;;  %772 = vmatmul.bf16.gmra.mxu3 %v582_v41  ;;  %vm471_vm8 = vmpackc.low %vm2213_vm5, %vm2209_vm4  ;;  %v325_v32 = vadd.f32 %v2165_v46, %v291_v11 }
  0xc7   :  { %v455_v58 = vpack.c.bf16 %v430_v49, %v429_v48  ;;  %v326_v33 = vadd.f32 %v2167_v47, %v292_v20  ;;  %v327_v34 = vadd.f32 %v2165_v46, %v293_v21  ;;  %v328_v35 = vadd.f32 %v2167_v47, %v294_v22 }
  0xc8   :  { %v344_v50 = vpack.c.bf16 %v320_v45, %v319_v44  ;;  %v175_v51 = vpop.f32.mrf.mxu0 }
  0xc9   :  { %v224_v52 = vpop.f32.mrf.mxu1  ;;  %v487_v4 = vsel %vm471_vm8, %v343_v27, %v455_v58  ;;  %v236_v38 = vpop.f32.mrf.mxu2  ;;  %v347_v42 = vpack.c.bf16 %v326_v33, %v325_v32  ;;  %v348_v43 = vpack.c.bf16 %v328_v35, %v327_v34 }
  0xca   :  { %v252_v55 = vpack.c.bf16 %v224_v52, %v175_v51  ;;  %v367_v56 = vunpack.c.l.bf16 %v344_v50  ;;  %v368_v57 = vunpack.c.h.bf16 %v344_v50  ;;  %v557_v14 = vunpack.c.l.b16 %v487_v4 }
  0xcb   :  { %v558_v15 = vunpack.c.h.b16 %v487_v4  ;;  %v373_v51 = vunpack.c.l.bf16 %v347_v42  ;;  %v374_v52 = vunpack.c.h.bf16 %v347_v42  ;;  %v257_v53 = vpack.c.bf16 %v236_v38, %v187_v37 }
  0xcc   :  { %v287_v59 = vunpack.c.l.bf16 %v252_v55  ;;  %v288_v60 = vunpack.c.h.bf16 %v252_v55  ;;  %vm2217_vm6 = vcmp.gt.f32.partialorder %v367_v56, 0.0  ;;  %vm2221_vm7 = vcmp.gt.f32.partialorder %v368_v57, 0.0 }
  0xcd   :  { %v431_v0 = vmul.f32 0.20019531, %v367_v56  ;;  %v432_v1 = vmul.f32 0.20019531, %v368_v57  ;;  %vm472_vm9 = vmpackc.low %vm2221_vm7, %vm2217_vm6  ;;  %v375_v55 = vunpack.c.l.bf16 %v348_v43  ;;  %v376_v56 = vunpack.c.h.bf16 %v348_v43 }
  0xce   :  { %v321_v2 = vadd.f32 %v2165_v46, %v287_v59  ;;  %v322_v3 = vadd.f32 %v2167_v47, %v288_v60  ;;  %v438_v4 = vmul.f32 0.20019531, %v374_v52  ;;  %vm2241_vm1 = vcmp.gt.f32.partialorder %v373_v51, 0.0 }
  0xcf   :  { %v456_v6 = vpack.c.bf16 %v432_v1, %v431_v0  ;;  %v190_v1 = vpop.f32.mrf.mxu3  ;;  %v439_v5 = vmul.f32 0.20019531, %v375_v55  ;;  %vm406_vm2 = vcmp.gt.f32.partialorder %v374_v52, 0.0  ;;  %vm407_vm3 = vcmp.gt.f32.partialorder %v375_v55, 0.0 }
  0xd0   :  { %v345_v9 = vpack.c.bf16 %v322_v3, %v321_v2  ;;  %v177_v10 = vpop.f32.mrf.mxu0  ;;  %v437_v3 = vmul.f32 0.20019531, %v373_v51  ;;  %vm408_vm4 = vcmp.gt.f32.partialorder %v376_v56, 0.0  ;;  %vm475_vm5 = vmpackc.low %vm406_vm2, %vm2241_vm1 }
  0xd1   :  { %v226_v12 = vpop.f32.mrf.mxu1  ;;  %v488_v13 = vsel %vm472_vm9, %v344_v50, %v456_v6  ;;  %v256_v50 = vpack.c.bf16 %v234_v8, %v185_v7  ;;  %v239_v2 = vpop.f32.mrf.mxu2  ;;  %v440_v6 = vmul.f32 0.20019531, %v376_v56  ;;  %v297_v7 = vunpack.c.l.bf16 %v257_v53  ;;  %vm476_vm6 = vmpackc.low %vm408_vm4, %vm407_vm3 }
  0xd2   :  { %v253_v16 = vpack.c.bf16 %v226_v12, %v177_v10  ;;  %v559_v17 = vunpack.c.l.b16 %v488_v13  ;;  %v560_v18 = vunpack.c.h.b16 %v488_v13  ;;  %v369_v19 = vunpack.c.l.bf16 %v345_v9 }
  0xd3   :  { %v370_v23 = vunpack.c.h.bf16 %v345_v9  ;;  %v295_v61 = vunpack.c.l.bf16 %v256_v50  ;;  %v296_v62 = vunpack.c.h.bf16 %v256_v50  ;;  %v298_v8 = vunpack.c.h.bf16 %v257_v53 }
  0xd4   :  { %v289_v24 = vunpack.c.l.bf16 %v253_v16  ;;  %v290_v25 = vunpack.c.h.bf16 %v253_v16  ;;  %v583_v26 = vpack.c.b16 %v559_v17, %v557_v14  ;;  %v584_v27 = vpack.c.b16 %v560_v18, %v558_v15 }
  0xd5   :  { %v433_v30 = vmul.f32 0.20019531, %v369_v19  ;;  %v434_v31 = vmul.f32 0.20019531, %v370_v23  ;;  %vm401_vm10 = vcmp.gt.f32.partialorder %v369_v19, 0.0  ;;  %vm402_vm11 = vcmp.gt.f32.partialorder %v370_v23, 0.0 }
  0xd6   :  { %v323_v28 = vadd.f32 %v2165_v46, %v289_v24  ;;  %v324_v29 = vadd.f32 %v2167_v47, %v290_v25  ;;  %728 = vmatmul.bf16.gmra.mxu2 %v583_v26  ;;  %777 = vmatmul.bf16.gmra.mxu3 %v584_v27  ;;  %vm473_vm14 = vmpackc.low %vm402_vm11, %vm401_vm10  ;;  %v329_v10 = vadd.f32 %v2165_v46, %v295_v61 }
  0xd7   :  { %v457_v41 = vpack.c.bf16 %v434_v31, %v433_v30  ;;  %v330_v11 = vadd.f32 %v2167_v47, %v296_v62  ;;  %v459_v12 = vpack.c.bf16 %v438_v4, %v437_v3  ;;  %v460_v13 = vpack.c.bf16 %v440_v6, %v439_v5  ;;  %v192_v20 = vpop.f32.mrf.mxu3 }
  0xd8   :  { %v346_v36 = vpack.c.bf16 %v324_v29, %v323_v28  ;;  %v331_v14 = vadd.f32 %v2165_v46, %v297_v7  ;;  %v332_v15 = vadd.f32 %v2167_v47, %v298_v8  ;;  %v258_v22 = vpack.c.bf16 %v239_v2, %v190_v1  ;;  %v1948_v7 = vld [vmem:[%s2412_s5 + $0x30] sm:$0xff] }
  0xd9   :  { %v489_v49 = vsel %vm473_vm14, %v345_v9, %v457_v41  ;;  %v349_v16 = vpack.c.bf16 %v330_v11, %v329_v10  ;;  %v491_v17 = vsel %vm475_vm5, %v347_v42, %v459_v12  ;;  %v492_v18 = vsel %vm476_vm6, %v348_v43, %v460_v13  ;;  %v241_v21 = vpop.f32.mrf.mxu2  ;;  %v1947_v10 = vld [vmem:[%s2412_s5 + $0x28] sm:$0xff] }
  0xda   :  { %v371_v39 = vunpack.c.l.bf16 %v346_v36  ;;  %v372_v40 = vunpack.c.h.bf16 %v346_v36  ;;  %v561_v57 = vunpack.c.l.b16 %v489_v49  ;;  %v562_v59 = vunpack.c.h.b16 %v489_v49 }
  0xdb   :  { %v350_v19 = vpack.c.bf16 %v332_v15, %v331_v14  ;;  %v565_v23 = vunpack.c.l.b16 %v491_v17  ;;  %v567_v24 = vunpack.c.l.b16 %v492_v18  ;;  %v259_v25 = vpack.c.bf16 %v241_v21, %v192_v20  ;;  %v1946_v15 = vld [vmem:[%s2412_s5 + $0x20] sm:$0xff]  ;;  %v1943_v20 = vld [vmem:[%s2412_s5 + $0x8] sm:$0xff] }
  0xdc   :  { %vm403_vm12 = vcmp.gt.f32.partialorder %v371_v39, 0.0  ;;  %vm404_vm13 = vcmp.gt.f32.partialorder %v372_v40, 0.0  ;;  %v435_v44 = vmul.f32 0.20019531, %v371_v39  ;;  %v436_v45 = vmul.f32 0.20019531, %v372_v40  ;;  %v819_v21 = vld [vmem:[%s2411_s4] sm:$0x1] }
  0xdd   :  { %vm474_vm15 = vmpackc.low %vm404_vm13, %vm403_vm12  ;;  %v566_v26 = vunpack.c.h.b16 %v491_v17  ;;  %v568_v27 = vunpack.c.h.b16 %v492_v18  ;;  %v377_v28 = vunpack.c.l.bf16 %v349_v16  ;;  %v378_v29 = vunpack.c.h.bf16 %v349_v16  ;;  %v1945_v18 = vld [vmem:[%s2412_s5 + $0x18] sm:$0xff] }
  0xde   :  { %v458_v48 = vpack.c.bf16 %v436_v45, %v435_v44  ;;  %v379_v30 = vunpack.c.l.bf16 %v350_v19  ;;  %v380_v31 = vunpack.c.h.bf16 %v350_v19  ;;  %v299_v32 = vunpack.c.l.bf16 %v258_v22  ;;  %v1949_v44 = vld [vmem:[%s2412_s5 + $0x38] sm:$0xff] }
  0xdf   :  { %v300_v33 = vunpack.c.h.bf16 %v258_v22  ;;  %v301_v34 = vunpack.c.l.bf16 %v259_v25  ;;  %v587_v35 = vpack.c.b16 %v567_v24, %v565_v23  ;;  %v441_v37 = vmul.f32 0.20019531, %v377_v28  ;;  %1081 = vmatpush.bf16.msrb.mxu0 %v1949_v44  ;;  %v1942_v22 = vld [vmem:[%s2412_s5] sm:$0xff] }
  0xe0   :  { %v490_v54 = vsel %vm474_vm15, %v346_v36, %v458_v48  ;;  %v588_v36 = vpack.c.b16 %v568_v27, %v566_v26  ;;  %v302_v38 = vunpack.c.h.bf16 %v259_v25  ;;  %v442_v39 = vmul.f32 0.20019531, %v378_v29 }
  0xe1   :  { %v563_v58 = vunpack.c.l.b16 %v490_v54  ;;  %v564_v60 = vunpack.c.h.b16 %v490_v54  ;;  %v443_v40 = vmul.f32 0.20019531, %v379_v30  ;;  %v444_v41 = vmul.f32 0.20019531, %v380_v31 }
  0xe2   :  { %vm2251_vm7 = vcmp.gt.f32.partialorder %v377_v28, 0.0  ;;  %vm2255_vm8 = vcmp.gt.f32.partialorder %v378_v29, 0.0  ;;  %vm411_vm9 = vcmp.gt.f32.partialorder %v379_v30, 0.0  ;;  %vm412_vm10 = vcmp.gt.f32.partialorder %v380_v31, 0.0 }
  0xe3   :  { %v585_v63 = vpack.c.b16 %v563_v58, %v561_v57  ;;  %v586_v0 = vpack.c.b16 %v564_v60, %v562_v59  ;;  %v333_v45 = vadd.f32 %v2165_v46, %v299_v32  ;;  %v334_v48 = vadd.f32 %v2167_v47, %v300_v33  ;;  %vm477_vm11 = vmpackc.low %vm2255_vm8, %vm2251_vm7  ;;  %1082 = vmatpush.bf16.msrb.mxu0 %v1948_v7 }
  0xe4   :  { %v335_v49 = vadd.f32 %v2165_v46, %v301_v34  ;;  %v336_v50 = vadd.f32 %v2167_v47, %v302_v38  ;;  %v461_v51 = vpack.c.bf16 %v442_v39, %v441_v37  ;;  %v462_v52 = vpack.c.bf16 %v444_v41, %v443_v40  ;;  %vm478_vm12 = vmpackc.low %vm412_vm10, %vm411_vm9 }
  0xe5   :  { %v351_v53 = vpack.c.bf16 %v334_v48, %v333_v45  ;;  %v821_v23 = vpack.i.b16 %v819_v21, %v819_v21 }
  0xe6   :  { %733 = vmatmul.bf16.gmra.mxu2 %v585_v63  ;;  %782 = vmatmul.bf16.gmra.mxu3 %v586_v0  ;;  %v352_v54 = vpack.c.bf16 %v336_v50, %v335_v49  ;;  %v493_v55 = vsel %vm477_vm11, %v349_v16, %v461_v51  ;;  %v494_v56 = vsel %vm478_vm12, %v350_v19, %v462_v52  ;;  %v1944_v19 = vld [vmem:[%s2412_s5 + $0x10] sm:$0xff] }
  0xe7   :  { %v569_v57 = vunpack.c.l.b16 %v493_v55  ;;  %v571_v58 = vunpack.c.l.b16 %v494_v56  ;;  %v570_v59 = vunpack.c.h.b16 %v493_v55  ;;  %v572_v60 = vunpack.c.h.b16 %v494_v56  ;;  %1083 = vmatpush.bf16.msrb.mxu0 %v1947_v10 }
  0xe8   :  { %v381_v61 = vunpack.c.l.bf16 %v351_v53  ;;  %v382_v46 = vunpack.c.h.bf16 %v351_v53  ;;  %v383_v62 = vunpack.c.l.bf16 %v352_v54  ;;  %v384_v47 = vunpack.c.h.bf16 %v352_v54 }
  0xe9   :  { %v589_v63 = vpack.c.b16 %v571_v58, %v569_v57  ;;  %v590_v0 = vpack.c.b16 %v572_v60, %v570_v59  ;;  %v823_v24 = vperm.slane %v821_v23, 0 }
  0xea   :  { %v445_v1 = vmul.f32 0.20019531, %v381_v61  ;;  %v446_v2 = vmul.f32 0.20019531, %v382_v46  ;;  %v447_v3 = vmul.f32 0.20019531, %v383_v62  ;;  %v448_v4 = vmul.f32 0.20019531, %v384_v47 }
  0xeb   :  { %vm413_vm13 = vcmp.gt.f32.partialorder %v381_v61, 0.0  ;;  %vm414_vm14 = vcmp.gt.f32.partialorder %v382_v46, 0.0  ;;  %vm415_vm15 = vcmp.gt.f32.partialorder %v383_v62, 0.0  ;;  %vm416_vm1 = vcmp.gt.f32.partialorder %v384_v47, 0.0  ;;  %1084 = vmatpush.bf16.msrb.mxu0 %v1946_v15 }
  0xec   :  { %v463_v5 = vpack.c.bf16 %v446_v2, %v445_v1  ;;  %v464_v6 = vpack.c.bf16 %v448_v4, %v447_v3  ;;  %vm479_vm2 = vmpackc.low %vm414_vm14, %vm413_vm13  ;;  %v2294_v29 = vunpack.c.l.bf16 %v823_v24 }
  0xed   :  { %vm480_vm3 = vmpackc.low %vm416_vm1, %vm415_vm15 }
  0xee   :  { %v495_v8 = vsel %vm479_vm2, %v351_v53, %v463_v5  ;;  %v496_v9 = vsel %vm480_vm3, %v352_v54, %v464_v6 }
  0xef   :  { %v573_v11 = vunpack.c.l.b16 %v495_v8  ;;  %v575_v12 = vunpack.c.l.b16 %v496_v9  ;;  %v574_v13 = vunpack.c.h.b16 %v495_v8  ;;  %v576_v14 = vunpack.c.h.b16 %v496_v9  ;;  %1085 = vmatpush.bf16.msrb.mxu0 %v1945_v18 }
  0xf1   :  { %v591_v16 = vpack.c.b16 %v575_v12, %v573_v11  ;;  %v592_v17 = vpack.c.b16 %v576_v14, %v574_v13 }
  0xf3   :  { %1086 = vmatpush.bf16.msrb.mxu0 %v1944_v19 }
  0xf6   :  { %738 = vmatmul.bf16.gmra.mxu2 %v587_v35  ;;  %787 = vmatmul.bf16.gmra.mxu3 %v588_v36 }
  0xf7   :  { %1087 = vmatpush.bf16.msrb.mxu0 %v1943_v20 }
  0xfb   :  { %1088 = vmatpush.bf16.msrb.mxu0 %v1942_v22 }
 0x106   :  { %743 = vmatmul.bf16.gmra.mxu2 %v589_v63  ;;  %792 = vmatmul.bf16.gmra.mxu3 %v590_v0 }
 0x116   :  { %748 = vmatmul.bf16.gmra.mxu2 %v591_v16  ;;  %797 = vmatmul.bf16.gmra.mxu3 %v592_v17 }
 0x129   :  { %v714_v25 = vpop.f32.mrf.mxu2  ;;  %v763_v26 = vpop.f32.mrf.mxu3 }
 0x12a   :  { %v764_v27 = vadd.f32 %v763_v26, %v714_v25 }
 0x12c   :  { %v803_v28 = vpack.c.bf16 %v764_v27, %v764_v27 }
 0x12e   :  { %v824_v30 = vunpack.c.l.bf16 %v803_v28 }
 0x130   :  { %v841_v31 = vadd.f32 %v2294_v29, %v824_v30 }
 0x131   :  { %v716_v32 = vpop.f32.mrf.mxu2  ;;  %v765_v33 = vpop.f32.mrf.mxu3 }
 0x132   :  { %v857_v34 = vpack.c.bf16 %v841_v31, %v841_v31  ;;  %v766_v35 = vadd.f32 %v765_v33, %v716_v32 }
 0x134   :  { %v873_v36 = vunpack.c.l.bf16 %v857_v34  ;;  %v804_v37 = vpack.c.bf16 %v766_v35, %v766_v35 }
 0x136   :  { %v825_v38 = vunpack.c.l.bf16 %v804_v37  ;;  %v905_v39 = vmul.f32 0.20019531, %v873_v36  ;;  %vm889_vm4 = vcmp.gt.f32.partialorder %v873_v36, 0.0 }
 0x137   :  { %vm937_vm6 = vmpackc.low %vm889_vm4, %vm889_vm4 }
 0x138   :  { %v842_v40 = vadd.f32 %v2294_v29, %v825_v38  ;;  %v921_v45 = vpack.c.bf16 %v905_v39, %v905_v39 }
 0x139   :  { %v719_v41 = vpop.f32.mrf.mxu2  ;;  %v768_v42 = vpop.f32.mrf.mxu3 }
 0x13a   :  { %v858_v43 = vpack.c.bf16 %v842_v40, %v842_v40  ;;  %v769_v44 = vadd.f32 %v768_v42, %v719_v41  ;;  %v953_v54 = vsel %vm937_vm6, %v857_v34, %v921_v45 }
 0x13b   :  { %v1001_v60 = vunpack.c.l.b16 %v953_v54 }
 0x13c   :  { %v874_v48 = vunpack.c.l.bf16 %v858_v43  ;;  %v805_v49 = vpack.c.bf16 %v769_v44, %v769_v44 }
 0x13e   :  { %vm890_vm5 = vcmp.gt.f32.partialorder %v874_v48, 0.0  ;;  %v906_v50 = vmul.f32 0.20019531, %v874_v48  ;;  %v826_v51 = vunpack.c.l.bf16 %v805_v49 }
 0x13f   :  { %vm938_vm7 = vmpackc.low %vm890_vm5, %vm890_vm5 }
 0x140   :  { %v922_v52 = vpack.c.bf16 %v906_v50, %v906_v50  ;;  %v843_v53 = vadd.f32 %v2294_v29, %v826_v51 }
 0x141   :  { %v721_v55 = vpop.f32.mrf.mxu2  ;;  %v770_v56 = vpop.f32.mrf.mxu3 }
 0x142   :  { %v859_v57 = vpack.c.bf16 %v843_v53, %v843_v53  ;;  %v771_v58 = vadd.f32 %v770_v56, %v721_v55  ;;  %v954_v59 = vsel %vm938_vm7, %v858_v43, %v922_v52 }
 0x143   :  { %v1002_v61 = vunpack.c.l.b16 %v954_v59 }
 0x144   :  { %v875_v46 = vunpack.c.l.bf16 %v859_v57  ;;  %v806_v62 = vpack.c.bf16 %v771_v58, %v771_v58 }
 0x145   :  { %v1017_v47 = vpack.c.b16 %v1002_v61, %v1001_v60 }
 0x146   :  { %v827_v63 = vunpack.c.l.bf16 %v806_v62  ;;  %v907_v0 = vmul.f32 0.20019531, %v875_v46  ;;  %vm891_vm8 = vcmp.gt.f32.partialorder %v875_v46, 0.0 }
 0x147   :  { %1089 = vmatmul.bf16.vlgmr.msrb.gmra.mxu0 %v1017_v47  ;;  %vm939_vm10 = vmpackc.low %vm891_vm8, %vm891_vm8 }
 0x148   :  { %v844_v1 = vadd.f32 %v2294_v29, %v827_v63  ;;  %v923_v8 = vpack.c.bf16 %v907_v0, %v907_v0 }
 0x149   :  { %v724_v2 = vpop.f32.mrf.mxu2  ;;  %v773_v3 = vpop.f32.mrf.mxu3 }
 0x14a   :  { %v860_v4 = vpack.c.bf16 %v844_v1, %v844_v1  ;;  %v774_v5 = vadd.f32 %v773_v3, %v724_v2  ;;  %v955_v13 = vsel %vm939_vm10, %v859_v57, %v923_v8 }
 0x14b   :  { %v1003_v19 = vunpack.c.l.b16 %v955_v13 }
 0x14c   :  { %v876_v6 = vunpack.c.l.bf16 %v860_v4  ;;  %v807_v7 = vpack.c.bf16 %v774_v5, %v774_v5 }
 0x14e   :  { %v908_v9 = vmul.f32 0.20019531, %v876_v6  ;;  %v828_v10 = vunpack.c.l.bf16 %v807_v7  ;;  %vm892_vm9 = vcmp.gt.f32.partialorder %v876_v6, 0.0 }
 0x14f   :  { %vm940_vm11 = vmpackc.low %vm892_vm9, %vm892_vm9 }
 0x150   :  { %v845_v11 = vadd.f32 %v2294_v29, %v828_v10  ;;  %v924_v12 = vpack.c.bf16 %v908_v9, %v908_v9 }
 0x151   :  { %v726_v14 = vpop.f32.mrf.mxu2  ;;  %v775_v15 = vpop.f32.mrf.mxu3 }
 0x152   :  { %v861_v16 = vpack.c.bf16 %v845_v11, %v845_v11  ;;  %v776_v17 = vadd.f32 %v775_v15, %v726_v14  ;;  %v956_v18 = vsel %vm940_vm11, %v860_v4, %v924_v12 }
 0x153   :  { %v1004_v20 = vunpack.c.l.b16 %v956_v18 }
 0x154   :  { %v877_v21 = vunpack.c.l.bf16 %v861_v16  ;;  %v808_v22 = vpack.c.bf16 %v776_v17, %v776_v17 }
 0x155   :  { %v1018_v23 = vpack.c.b16 %v1004_v20, %v1003_v19 }
 0x156   :  { %v829_v24 = vunpack.c.l.bf16 %v808_v22  ;;  %v909_v25 = vmul.f32 0.20019531, %v877_v21  ;;  %vm893_vm12 = vcmp.gt.f32.partialorder %v877_v21, 0.0 }
 0x157   :  { %1094 = vmatmul.bf16.gmra.mxu0 %v1018_v23  ;;  %vm941_vm14 = vmpackc.low %vm893_vm12, %vm893_vm12 }
 0x158   :  { %v846_v26 = vadd.f32 %v2294_v29, %v829_v24  ;;  %v925_v34 = vpack.c.bf16 %v909_v25, %v909_v25 }
 0x159   :  { %v729_v27 = vpop.f32.mrf.mxu2  ;;  %v778_v28 = vpop.f32.mrf.mxu3 }
 0x15a   :  { %v862_v30 = vpack.c.bf16 %v846_v26, %v846_v26  ;;  %v779_v31 = vadd.f32 %v778_v28, %v729_v27  ;;  %v957_v39 = vsel %vm941_vm14, %v861_v16, %v925_v34 }
 0x15b   :  { %v1005_v45 = vunpack.c.l.b16 %v957_v39 }
 0x15c   :  { %v878_v32 = vunpack.c.l.bf16 %v862_v30  ;;  %v809_v33 = vpack.c.bf16 %v779_v31, %v779_v31 }
 0x15e   :  { %v910_v35 = vmul.f32 0.20019531, %v878_v32  ;;  %v830_v36 = vunpack.c.l.bf16 %v809_v33  ;;  %vm894_vm13 = vcmp.gt.f32.partialorder %v878_v32, 0.0 }
 0x15f   :  { %vm942_vm15 = vmpackc.low %vm894_vm13, %vm894_vm13 }
 0x160   :  { %v847_v37 = vadd.f32 %v2294_v29, %v830_v36  ;;  %v926_v38 = vpack.c.bf16 %v910_v35, %v910_v35 }
 0x161   :  { %v731_v40 = vpop.f32.mrf.mxu2  ;;  %v780_v41 = vpop.f32.mrf.mxu3 }
 0x162   :  { %v863_v42 = vpack.c.bf16 %v847_v37, %v847_v37  ;;  %v781_v43 = vadd.f32 %v780_v41, %v731_v40  ;;  %v958_v44 = vsel %vm942_vm15, %v862_v30, %v926_v38 }
 0x163   :  { %v1006_v48 = vunpack.c.l.b16 %v958_v44 }
 0x164   :  { %v879_v49 = vunpack.c.l.bf16 %v863_v42  ;;  %v810_v50 = vpack.c.bf16 %v781_v43, %v781_v43 }
 0x165   :  { %v1019_v51 = vpack.c.b16 %v1006_v48, %v1005_v45 }
 0x166   :  { %v831_v52 = vunpack.c.l.bf16 %v810_v50  ;;  %v911_v53 = vmul.f32 0.20019531, %v879_v49  ;;  %vm895_vm1 = vcmp.gt.f32.partialorder %v879_v49, 0.0 }
 0x167   :  { %1099 = vmatmul.bf16.gmra.mxu0 %v1019_v51  ;;  %vm943_vm3 = vmpackc.low %vm895_vm1, %vm895_vm1 }
 0x168   :  { %v848_v54 = vadd.f32 %v2294_v29, %v831_v52  ;;  %v927_v61 = vpack.c.bf16 %v911_v53, %v911_v53 }
 0x169   :  { %v734_v55 = vpop.f32.mrf.mxu2  ;;  %v783_v56 = vpop.f32.mrf.mxu3 }
 0x16a   :  { %v864_v57 = vpack.c.bf16 %v848_v54, %v848_v54  ;;  %v784_v58 = vadd.f32 %v783_v56, %v734_v55  ;;  %v959_v0 = vsel %vm943_vm3, %v863_v42, %v927_v61 }
 0x16b   :  { %v1007_v6 = vunpack.c.l.b16 %v959_v0 }
 0x16c   :  { %v880_v59 = vunpack.c.l.bf16 %v864_v57  ;;  %v811_v60 = vpack.c.bf16 %v784_v58, %v784_v58 }
 0x16e   :  { %v912_v46 = vmul.f32 0.20019531, %v880_v59  ;;  %v832_v62 = vunpack.c.l.bf16 %v811_v60  ;;  %vm896_vm2 = vcmp.gt.f32.partialorder %v880_v59, 0.0 }
 0x16f   :  { %vm944_vm4 = vmpackc.low %vm896_vm2, %vm896_vm2 }
 0x170   :  { %v849_v47 = vadd.f32 %v2294_v29, %v832_v62  ;;  %v928_v63 = vpack.c.bf16 %v912_v46, %v912_v46 }
 0x171   :  { %v736_v1 = vpop.f32.mrf.mxu2  ;;  %v785_v2 = vpop.f32.mrf.mxu3 }
 0x172   :  { %v865_v3 = vpack.c.bf16 %v849_v47, %v849_v47  ;;  %v786_v4 = vadd.f32 %v785_v2, %v736_v1  ;;  %v960_v5 = vsel %vm944_vm4, %v864_v57, %v928_v63 }
 0x173   :  { %v1008_v7 = vunpack.c.l.b16 %v960_v5 }
 0x174   :  { %v881_v8 = vunpack.c.l.bf16 %v865_v3  ;;  %v812_v9 = vpack.c.bf16 %v786_v4, %v786_v4 }
 0x175   :  { %v1020_v10 = vpack.c.b16 %v1008_v7, %v1007_v6 }
 0x176   :  { %v833_v11 = vunpack.c.l.bf16 %v812_v9  ;;  %v913_v12 = vmul.f32 0.20019531, %v881_v8  ;;  %vm897_vm5 = vcmp.gt.f32.partialorder %v881_v8, 0.0 }
 0x177   :  { %1104 = vmatmul.bf16.gmra.mxu0 %v1020_v10  ;;  %vm945_vm7 = vmpackc.low %vm897_vm5, %vm897_vm5 }
 0x178   :  { %v850_v13 = vadd.f32 %v2294_v29, %v833_v11  ;;  %v929_v20 = vpack.c.bf16 %v913_v12, %v913_v12 }
 0x179   :  { %v739_v14 = vpop.f32.mrf.mxu2  ;;  %v788_v15 = vpop.f32.mrf.mxu3 }
 0x17a   :  { %v866_v16 = vpack.c.bf16 %v850_v13, %v850_v13  ;;  %v789_v17 = vadd.f32 %v788_v15, %v739_v14  ;;  %v961_v25 = vsel %vm945_vm7, %v865_v3, %v929_v20 }
 0x17b   :  { %v1009_v32 = vunpack.c.l.b16 %v961_v25 }
 0x17c   :  { %v882_v18 = vunpack.c.l.bf16 %v866_v16  ;;  %v813_v19 = vpack.c.bf16 %v789_v17, %v789_v17 }
 0x17e   :  { %v914_v21 = vmul.f32 0.20019531, %v882_v18  ;;  %v834_v22 = vunpack.c.l.bf16 %v813_v19  ;;  %vm898_vm6 = vcmp.gt.f32.partialorder %v882_v18, 0.0 }
 0x17f   :  { %vm946_vm8 = vmpackc.low %vm898_vm6, %vm898_vm6 }
 0x180   :  { %v851_v23 = vadd.f32 %v2294_v29, %v834_v22  ;;  %v930_v24 = vpack.c.bf16 %v914_v21, %v914_v21 }
 0x181   :  { %v741_v26 = vpop.f32.mrf.mxu2  ;;  %v790_v27 = vpop.f32.mrf.mxu3 }
 0x182   :  { %v867_v28 = vpack.c.bf16 %v851_v23, %v851_v23  ;;  %v791_v30 = vadd.f32 %v790_v27, %v741_v26  ;;  %v962_v31 = vsel %vm946_vm8, %v866_v16, %v930_v24 }
 0x183   :  { %v1010_v33 = vunpack.c.l.b16 %v962_v31 }
 0x184   :  { %v883_v34 = vunpack.c.l.bf16 %v867_v28  ;;  %v814_v35 = vpack.c.bf16 %v791_v30, %v791_v30 }
 0x185   :  { %v1021_v36 = vpack.c.b16 %v1010_v33, %v1009_v32  ;;  %v1953_v33 = vld [vmem:[%s2414_s7 + $0x18] sm:$0xff] }
 0x186   :  { %v835_v37 = vunpack.c.l.bf16 %v814_v35  ;;  %v915_v38 = vmul.f32 0.20019531, %v883_v34  ;;  %vm899_vm9 = vcmp.gt.f32.partialorder %v883_v34, 0.0  ;;  %1397 = vmatpush.bf16.msrb.mxu1 %v1953_v33 }
 0x187   :  { %1109 = vmatmul.bf16.gmra.mxu0 %v1021_v36  ;;  %vm947_vm11 = vmpackc.low %vm899_vm9, %vm899_vm9 }
 0x188   :  { %v852_v39 = vadd.f32 %v2294_v29, %v835_v37  ;;  %v931_v48 = vpack.c.bf16 %v915_v38, %v915_v38  ;;  %v1951_v38 = vld [vmem:[%s2414_s7 + $0x8] sm:$0xff] }
 0x189   :  { %v744_v40 = vpop.f32.mrf.mxu2  ;;  %v793_v41 = vpop.f32.mrf.mxu3 }
 0x18a   :  { %v868_v42 = vpack.c.bf16 %v852_v39, %v852_v39  ;;  %v794_v43 = vadd.f32 %v793_v41, %v744_v40  ;;  %v963_v53 = vsel %vm947_vm11, %v867_v28, %v931_v48  ;;  %v1146_v39 = vld [vmem:[%s2413_s6] sm:$0x1] }
 0x18b   :  { %v1011_v59 = vunpack.c.l.b16 %v963_v53  ;;  %v1950_v40 = vld [vmem:[%s2414_s7] sm:$0xff]  ;;  %v1148_v41 = vpack.i.b16 %v1146_v39, %v1146_v39 }
 0x18c   :  { %v884_v44 = vunpack.c.l.bf16 %v868_v42  ;;  %v815_v45 = vpack.c.bf16 %v794_v43, %v794_v43 }
 0x18e   :  { %v916_v49 = vmul.f32 0.20019531, %v884_v44  ;;  %v836_v50 = vunpack.c.l.bf16 %v815_v45  ;;  %vm900_vm10 = vcmp.gt.f32.partialorder %v884_v44, 0.0 }
 0x18f   :  { %vm948_vm12 = vmpackc.low %vm900_vm10, %vm900_vm10  ;;  %vm1368_vm10 = vcmask 523264  }
 0x190   :  { %v853_v51 = vadd.f32 %v2294_v29, %v836_v50  ;;  %v932_v52 = vpack.c.bf16 %v916_v49, %v916_v49 }
 0x191   :  { %v746_v54 = vpop.f32.mrf.mxu2  ;;  %v795_v55 = vpop.f32.mrf.mxu3 }
 0x192   :  { %v869_v56 = vpack.c.bf16 %v853_v51, %v853_v51  ;;  %v796_v57 = vadd.f32 %v795_v55, %v746_v54  ;;  %v964_v58 = vsel %vm948_vm12, %v868_v42, %v932_v52  ;;  %v1150_v42 = vperm.slane %v1148_v41, 0 }
 0x193   :  { %v1012_v60 = vunpack.c.l.b16 %v964_v58 }
 0x194   :  { %v885_v61 = vunpack.c.l.bf16 %v869_v56  ;;  %v816_v46 = vpack.c.bf16 %v796_v57, %v796_v57  ;;  %v2327_v45 = vunpack.c.l.bf16 %v1150_v42 }
 0x195   :  { %v1022_v62 = vpack.c.b16 %v1012_v60, %v1011_v59 }
 0x196   :  { %v837_v47 = vunpack.c.l.bf16 %v816_v46  ;;  %v917_v63 = vmul.f32 0.20019531, %v885_v61  ;;  %vm901_vm13 = vcmp.gt.f32.partialorder %v885_v61, 0.0 }
 0x197   :  { %1114 = vmatmul.bf16.gmra.mxu0 %v1022_v62  ;;  %vm949_vm15 = vmpackc.low %vm901_vm13, %vm901_vm13 }
 0x198   :  { %v854_v0 = vadd.f32 %v2294_v29, %v837_v47  ;;  %v933_v7 = vpack.c.bf16 %v917_v63, %v917_v63 }
 0x199   :  { %v749_v1 = vpop.f32.mrf.mxu2  ;;  %v798_v2 = vpop.f32.mrf.mxu3 }
 0x19a   :  { %v870_v3 = vpack.c.bf16 %v854_v0, %v854_v0  ;;  %v799_v4 = vadd.f32 %v798_v2, %v749_v1  ;;  %v965_v12 = vsel %vm949_vm15, %v869_v56, %v933_v7 }
 0x19b   :  { %v1013_v18 = vunpack.c.l.b16 %v965_v12 }
 0x19c   :  { %v886_v5 = vunpack.c.l.bf16 %v870_v3  ;;  %v817_v6 = vpack.c.bf16 %v799_v4, %v799_v4 }
 0x19e   :  { %v918_v8 = vmul.f32 0.20019531, %v886_v5  ;;  %v838_v9 = vunpack.c.l.bf16 %v817_v6  ;;  %vm902_vm14 = vcmp.gt.f32.partialorder %v886_v5, 0.0 }
 0x19f   :  { %vm950_vm1 = vmpackc.low %vm902_vm14, %vm902_vm14 }
 0x1a0   :  { %v855_v10 = vadd.f32 %v2294_v29, %v838_v9  ;;  %v934_v11 = vpack.c.bf16 %v918_v8, %v918_v8 }
 0x1a1   :  { %v751_v13 = vpop.f32.mrf.mxu2  ;;  %v800_v14 = vpop.f32.mrf.mxu3 }
 0x1a2   :  { %v871_v15 = vpack.c.bf16 %v855_v10, %v855_v10  ;;  %v801_v16 = vadd.f32 %v800_v14, %v751_v13  ;;  %v966_v17 = vsel %vm950_vm1, %v870_v3, %v934_v11 }
 0x1a3   :  { %v1014_v19 = vunpack.c.l.b16 %v966_v17 }
 0x1a4   :  { %v887_v20 = vunpack.c.l.bf16 %v871_v15  ;;  %v818_v21 = vpack.c.bf16 %v801_v16, %v801_v16 }
 0x1a5   :  { %v1023_v22 = vpack.c.b16 %v1014_v19, %v1013_v18 }
 0x1a6   :  { %v839_v23 = vunpack.c.l.bf16 %v818_v21  ;;  %v919_v24 = vmul.f32 0.20019531, %v887_v20  ;;  %vm903_vm2 = vcmp.gt.f32.partialorder %v887_v20, 0.0 }
 0x1a7   :  { %1119 = vmatmul.bf16.gmra.mxu0 %v1023_v22  ;;  %vm951_vm4 = vmpackc.low %vm903_vm2, %vm903_vm2 }
 0x1a8   :  { %v856_v25 = vadd.f32 %v2294_v29, %v839_v23  ;;  %v935_v27 = vpack.c.bf16 %v919_v24, %v919_v24  ;;  %v1952_v29 = vld [vmem:[%s2414_s7 + $0x10] sm:$0xff] }
 0x1a9   :  { %1398 = vmatpush.bf16.msrb.mxu1 %v1952_v29 }
 0x1aa   :  { %v872_v26 = vpack.c.bf16 %v856_v25, %v856_v25  ;;  %v967_v32 = vsel %vm951_vm4, %v871_v15, %v935_v27 }
 0x1ab   :  { %v1015_v35 = vunpack.c.l.b16 %v967_v32 }
 0x1ac   :  { %v888_v28 = vunpack.c.l.bf16 %v872_v26 }
 0x1ad   :  { %1399 = vmatpush.bf16.msrb.mxu1 %v1951_v38 }
 0x1ae   :  { %vm904_vm3 = vcmp.gt.f32.partialorder %v888_v28, 0.0  ;;  %v920_v30 = vmul.f32 0.20019531, %v888_v28 }
 0x1af   :  { %vm952_vm5 = vmpackc.low %vm904_vm3, %vm904_vm3 }
 0x1b0   :  { %v936_v31 = vpack.c.bf16 %v920_v30, %v920_v30 }
 0x1b1   :  { %1400 = vmatpush.bf16.msrb.mxu1 %v1950_v40 }
 0x1b2   :  { %v968_v34 = vsel %vm952_vm5, %v872_v26, %v936_v31 }
 0x1b3   :  { %v1016_v36 = vunpack.c.l.b16 %v968_v34 }
 0x1b5   :  { %v1024_v37 = vpack.c.b16 %v1016_v36, %v1015_v35 }
 0x1b7   :  { %1124 = vmatmul.bf16.gmra.mxu0 %v1024_v37 }
 0x1c4   :  { %v1090_v43 = vpop.f32.mrf.mxu0 }
 0x1c5   :  { %v1130_v44 = vpack.c.bf16 %v1090_v43, %v1090_v43 }
 0x1c7   :  { %v1151_v48 = vunpack.c.l.bf16 %v1130_v44 }
 0x1c9   :  { %v1168_v49 = vadd.f32 %v2327_v45, %v1151_v48 }
 0x1cb   :  { %v1184_v50 = vpack.c.bf16 %v1168_v49, %v1168_v49 }
 0x1cc   :  { %v1092_v51 = vpop.f32.mrf.mxu0 }
 0x1cd   :  { %v1200_v52 = vunpack.c.l.bf16 %v1184_v50  ;;  %v1131_v53 = vpack.c.bf16 %v1092_v51, %v1092_v51 }
 0x1cf   :  { %v1152_v54 = vunpack.c.l.bf16 %v1131_v53  ;;  %v1232_v55 = vmul.f32 0.20019531, %v1200_v52  ;;  %vm1216_vm6 = vcmp.gt.f32.partialorder %v1200_v52, 0.0 }
 0x1d0   :  { %vm1264_vm8 = vmpackc.low %vm1216_vm6, %vm1216_vm6 }
 0x1d1   :  { %v1169_v56 = vadd.f32 %v2327_v45, %v1152_v54  ;;  %v1248_v59 = vpack.c.bf16 %v1232_v55, %v1232_v55 }
 0x1d3   :  { %v1185_v57 = vpack.c.bf16 %v1169_v56, %v1169_v56  ;;  %v1280_v47 = vsel %vm1264_vm8, %v1184_v50, %v1248_v59 }
 0x1d4   :  { %v1095_v58 = vpop.f32.mrf.mxu0  ;;  %v1320_v3 = vunpack.c.l.b16 %v1280_v47 }
 0x1d5   :  { %v1201_v60 = vunpack.c.l.bf16 %v1185_v57  ;;  %v1132_v61 = vpack.c.bf16 %v1095_v58, %v1095_v58 }
 0x1d7   :  { %vm1217_vm7 = vcmp.gt.f32.partialorder %v1201_v60, 0.0  ;;  %v1233_v46 = vmul.f32 0.20019531, %v1201_v60  ;;  %v1153_v62 = vunpack.c.l.bf16 %v1132_v61 }
 0x1d8   :  { %vm1265_vm9 = vmpackc.low %vm1217_vm7, %vm1217_vm7 }
 0x1d9   :  { %v1249_v63 = vpack.c.bf16 %v1233_v46, %v1233_v46  ;;  %v1170_v0 = vadd.f32 %v2327_v45, %v1153_v62 }
 0x1db   :  { %v1281_v1 = vsel %vm1265_vm9, %v1185_v57, %v1249_v63  ;;  %v1186_v2 = vpack.c.bf16 %v1170_v0, %v1170_v0 }
 0x1dc   :  { %v1321_v4 = vunpack.c.l.b16 %v1281_v1  ;;  %v1097_v5 = vpop.f32.mrf.mxu0 }
 0x1dd   :  { %v1202_v6 = vunpack.c.l.bf16 %v1186_v2  ;;  %v1133_v7 = vpack.c.bf16 %v1097_v5, %v1097_v5 }
 0x1de   :  { %v1336_v8 = vpack.c.b16 %v1321_v4, %v1320_v3 }
 0x1df   :  { %v1154_v9 = vunpack.c.l.bf16 %v1133_v7  ;;  %v1234_v10 = vmul.f32 0.20019531, %v1202_v6  ;;  %vm1218_vm11 = vcmp.gt.f32.partialorder %v1202_v6, 0.0 }
 0x1e0   :  { %1904 = vmatmul.msk.bf16.vlgmr.msrb.gmra.mxu1 %vm1368_vm10, %v1336_v8  ;;  %vm1266_vm13 = vmpackc.low %vm1218_vm11, %vm1218_vm11 }
 0x1e1   :  { %v1171_v11 = vadd.f32 %v2327_v45, %v1154_v9  ;;  %v1250_v14 = vpack.c.bf16 %v1234_v10, %v1234_v10 }
 0x1e3   :  { %v1187_v12 = vpack.c.bf16 %v1171_v11, %v1171_v11  ;;  %v1282_v21 = vsel %vm1266_vm13, %v1186_v2, %v1250_v14 }
 0x1e4   :  { %v1100_v13 = vpop.f32.mrf.mxu0  ;;  %v1322_v25 = vunpack.c.l.b16 %v1282_v21 }
 0x1e5   :  { %v1203_v15 = vunpack.c.l.bf16 %v1187_v12  ;;  %v1134_v16 = vpack.c.bf16 %v1100_v13, %v1100_v13 }
 0x1e7   :  { %vm1219_vm12 = vcmp.gt.f32.partialorder %v1203_v15, 0.0  ;;  %v1235_v17 = vmul.f32 0.20019531, %v1203_v15  ;;  %v1155_v18 = vunpack.c.l.bf16 %v1134_v16 }
 0x1e8   :  { %vm1267_vm14 = vmpackc.low %vm1219_vm12, %vm1219_vm12 }
 0x1e9   :  { %v1251_v19 = vpack.c.bf16 %v1235_v17, %v1235_v17  ;;  %v1172_v20 = vadd.f32 %v2327_v45, %v1155_v18 }
 0x1eb   :  { %v1188_v22 = vpack.c.bf16 %v1172_v20, %v1172_v20  ;;  %v1283_v23 = vsel %vm1267_vm14, %v1187_v12, %v1251_v19 }
 0x1ec   :  { %v1102_v24 = vpop.f32.mrf.mxu0  ;;  %v1323_v26 = vunpack.c.l.b16 %v1283_v23 }
 0x1ed   :  { %v1204_v27 = vunpack.c.l.bf16 %v1188_v22  ;;  %v1135_v28 = vpack.c.bf16 %v1102_v24, %v1102_v24 }
 0x1ee   :  { %v1337_v30 = vpack.c.b16 %v1323_v26, %v1322_v25 }
 0x1ef   :  { %v1156_v31 = vunpack.c.l.bf16 %v1135_v28  ;;  %v1236_v32 = vmul.f32 0.20019531, %v1204_v27  ;;  %vm1220_vm15 = vcmp.gt.f32.partialorder %v1204_v27, 0.0 }
 0x1f0   :  { %1905 = vmatmul.msk.bf16.gmra.mxu1 %vm1368_vm10, %v1337_v30  ;;  %vm1268_vm2 = vmpackc.low %vm1220_vm15, %vm1220_vm15 }
 0x1f1   :  { %v1173_v33 = vadd.f32 %v2327_v45, %v1156_v31  ;;  %v1252_v36 = vpack.c.bf16 %v1236_v32, %v1236_v32 }
 0x1f3   :  { %v1189_v34 = vpack.c.bf16 %v1173_v33, %v1173_v33  ;;  %v1284_v42 = vsel %vm1268_vm2, %v1188_v22, %v1252_v36 }
 0x1f4   :  { %v1105_v35 = vpop.f32.mrf.mxu0  ;;  %v1324_v49 = vunpack.c.l.b16 %v1284_v42 }
 0x1f5   :  { %v1205_v29 = vunpack.c.l.bf16 %v1189_v34  ;;  %v1136_v37 = vpack.c.bf16 %v1105_v35, %v1105_v35 }
 0x1f7   :  { %vm1221_vm1 = vcmp.gt.f32.partialorder %v1205_v29, 0.0  ;;  %v1237_v38 = vmul.f32 0.20019531, %v1205_v29  ;;  %v1157_v39 = vunpack.c.l.bf16 %v1136_v37 }
 0x1f8   :  { %vm1269_vm3 = vmpackc.low %vm1221_vm1, %vm1221_vm1 }
 0x1f9   :  { %v1253_v40 = vpack.c.bf16 %v1237_v38, %v1237_v38  ;;  %v1174_v41 = vadd.f32 %v2327_v45, %v1157_v39 }
 0x1fb   :  { %v1190_v43 = vpack.c.bf16 %v1174_v41, %v1174_v41  ;;  %v1285_v44 = vsel %vm1269_vm3, %v1189_v34, %v1253_v40 }
 0x1fc   :  { %v1107_v48 = vpop.f32.mrf.mxu0  ;;  %v1325_v50 = vunpack.c.l.b16 %v1285_v44 }
 0x1fd   :  { %v1206_v51 = vunpack.c.l.bf16 %v1190_v43  ;;  %v1137_v52 = vpack.c.bf16 %v1107_v48, %v1107_v48 }
 0x1fe   :  { %v1338_v53 = vpack.c.b16 %v1325_v50, %v1324_v49 }
 0x1ff   :  { %v1158_v54 = vunpack.c.l.bf16 %v1137_v52  ;;  %v1238_v55 = vmul.f32 0.20019531, %v1206_v51  ;;  %vm1222_vm4 = vcmp.gt.f32.partialorder %v1206_v51, 0.0 }
 0x200   :  { %1906 = vmatmul.msk.bf16.gmra.mxu1 %vm1368_vm10, %v1338_v53  ;;  %vm1270_vm6 = vmpackc.low %vm1222_vm4, %vm1222_vm4 }
 0x201   :  { %v1175_v56 = vadd.f32 %v2327_v45, %v1158_v54  ;;  %v1254_v59 = vpack.c.bf16 %v1238_v55, %v1238_v55 }
 0x203   :  { %v1191_v57 = vpack.c.bf16 %v1175_v56, %v1175_v56  ;;  %v1286_v0 = vsel %vm1270_vm6, %v1190_v43, %v1254_v59 }
 0x204   :  { %v1110_v58 = vpop.f32.mrf.mxu0  ;;  %v1326_v4 = vunpack.c.l.b16 %v1286_v0 }
 0x205   :  { %v1207_v60 = vunpack.c.l.bf16 %v1191_v57  ;;  %v1138_v61 = vpack.c.bf16 %v1110_v58, %v1110_v58 }
 0x207   :  { %vm1223_vm5 = vcmp.gt.f32.partialorder %v1207_v60, 0.0  ;;  %v1239_v46 = vmul.f32 0.20019531, %v1207_v60  ;;  %v1159_v62 = vunpack.c.l.bf16 %v1138_v61 }
 0x208   :  { %vm1271_vm7 = vmpackc.low %vm1223_vm5, %vm1223_vm5 }
 0x209   :  { %v1255_v47 = vpack.c.bf16 %v1239_v46, %v1239_v46  ;;  %v1176_v63 = vadd.f32 %v2327_v45, %v1159_v62 }
 0x20b   :  { %v1192_v1 = vpack.c.bf16 %v1176_v63, %v1176_v63  ;;  %v1287_v2 = vsel %vm1271_vm7, %v1191_v57, %v1255_v47 }
 0x20c   :  { %v1112_v3 = vpop.f32.mrf.mxu0  ;;  %v1327_v5 = vunpack.c.l.b16 %v1287_v2 }
 0x20d   :  { %v1208_v6 = vunpack.c.l.bf16 %v1192_v1  ;;  %v1139_v7 = vpack.c.bf16 %v1112_v3, %v1112_v3 }
 0x20e   :  { %v1339_v8 = vpack.c.b16 %v1327_v5, %v1326_v4 }
 0x20f   :  { %v1160_v9 = vunpack.c.l.bf16 %v1139_v7  ;;  %v1240_v10 = vmul.f32 0.20019531, %v1208_v6  ;;  %vm1224_vm8 = vcmp.gt.f32.partialorder %v1208_v6, 0.0 }
 0x210   :  { %1907 = vmatmul.msk.bf16.gmra.mxu1 %vm1368_vm10, %v1339_v8  ;;  %vm1272_vm11 = vmpackc.low %vm1224_vm8, %vm1224_vm8 }
 0x211   :  { %v1177_v11 = vadd.f32 %v2327_v45, %v1160_v9  ;;  %v1256_v14 = vpack.c.bf16 %v1240_v10, %v1240_v10 }
 0x213   :  { %v1193_v12 = vpack.c.bf16 %v1177_v11, %v1177_v11  ;;  %v1288_v21 = vsel %vm1272_vm11, %v1192_v1, %v1256_v14 }
 0x214   :  { %v1115_v13 = vpop.f32.mrf.mxu0  ;;  %v1328_v25 = vunpack.c.l.b16 %v1288_v21 }
 0x215   :  { %v1209_v15 = vunpack.c.l.bf16 %v1193_v12  ;;  %v1140_v16 = vpack.c.bf16 %v1115_v13, %v1115_v13 }
 0x217   :  { %vm1225_vm9 = vcmp.gt.f32.partialorder %v1209_v15, 0.0  ;;  %v1241_v17 = vmul.f32 0.20019531, %v1209_v15  ;;  %v1161_v18 = vunpack.c.l.bf16 %v1140_v16 }
 0x218   :  { %vm1273_vm12 = vmpackc.low %vm1225_vm9, %vm1225_vm9 }
 0x219   :  { %v1257_v19 = vpack.c.bf16 %v1241_v17, %v1241_v17  ;;  %v1178_v20 = vadd.f32 %v2327_v45, %v1161_v18 }
 0x21b   :  { %v1194_v22 = vpack.c.bf16 %v1178_v20, %v1178_v20  ;;  %v1289_v23 = vsel %vm1273_vm12, %v1193_v12, %v1257_v19 }
 0x21c   :  { %v1117_v24 = vpop.f32.mrf.mxu0  ;;  %v1329_v26 = vunpack.c.l.b16 %v1289_v23 }
 0x21d   :  { %v1210_v27 = vunpack.c.l.bf16 %v1194_v22  ;;  %v1141_v28 = vpack.c.bf16 %v1117_v24, %v1117_v24 }
 0x21e   :  { %v1340_v30 = vpack.c.b16 %v1329_v26, %v1328_v25 }
 0x21f   :  { %v1162_v31 = vunpack.c.l.bf16 %v1141_v28  ;;  %v1242_v32 = vmul.f32 0.20019531, %v1210_v27  ;;  %vm1226_vm13 = vcmp.gt.f32.partialorder %v1210_v27, 0.0 }
 0x220   :  { %1908 = vmatmul.msk.bf16.gmra.mxu1 %vm1368_vm10, %v1340_v30  ;;  %vm1274_vm15 = vmpackc.low %vm1226_vm13, %vm1226_vm13 }
 0x221   :  { %v1179_v33 = vadd.f32 %v2327_v45, %v1162_v31  ;;  %v1258_v36 = vpack.c.bf16 %v1242_v32, %v1242_v32 }
 0x223   :  { %v1195_v34 = vpack.c.bf16 %v1179_v33, %v1179_v33  ;;  %v1290_v42 = vsel %vm1274_vm15, %v1194_v22, %v1258_v36 }
 0x224   :  { %v1120_v35 = vpop.f32.mrf.mxu0  ;;  %v1330_v49 = vunpack.c.l.b16 %v1290_v42 }
 0x225   :  { %v1211_v29 = vunpack.c.l.bf16 %v1195_v34  ;;  %v1142_v37 = vpack.c.bf16 %v1120_v35, %v1120_v35 }
 0x227   :  { %vm1227_vm14 = vcmp.gt.f32.partialorder %v1211_v29, 0.0  ;;  %v1243_v38 = vmul.f32 0.20019531, %v1211_v29  ;;  %v1163_v39 = vunpack.c.l.bf16 %v1142_v37 }
 0x228   :  { %vm1275_vm1 = vmpackc.low %vm1227_vm14, %vm1227_vm14 }
 0x229   :  { %v1259_v40 = vpack.c.bf16 %v1243_v38, %v1243_v38  ;;  %v1180_v41 = vadd.f32 %v2327_v45, %v1163_v39 }
 0x22b   :  { %v1196_v43 = vpack.c.bf16 %v1180_v41, %v1180_v41  ;;  %v1291_v44 = vsel %vm1275_vm1, %v1195_v34, %v1259_v40 }
 0x22c   :  { %v1122_v48 = vpop.f32.mrf.mxu0  ;;  %v1331_v50 = vunpack.c.l.b16 %v1291_v44 }
 0x22d   :  { %v1212_v51 = vunpack.c.l.bf16 %v1196_v43  ;;  %v1143_v52 = vpack.c.bf16 %v1122_v48, %v1122_v48 }
 0x22e   :  { %v1341_v53 = vpack.c.b16 %v1331_v50, %v1330_v49 }
 0x22f   :  { %v1164_v54 = vunpack.c.l.bf16 %v1143_v52  ;;  %v1244_v55 = vmul.f32 0.20019531, %v1212_v51  ;;  %vm1228_vm2 = vcmp.gt.f32.partialorder %v1212_v51, 0.0 }
 0x230   :  { %1909 = vmatmul.msk.bf16.gmra.mxu1 %vm1368_vm10, %v1341_v53  ;;  %vm1276_vm4 = vmpackc.low %vm1228_vm2, %vm1228_vm2 }
 0x231   :  { %v1181_v56 = vadd.f32 %v2327_v45, %v1164_v54  ;;  %v1260_v59 = vpack.c.bf16 %v1244_v55, %v1244_v55 }
 0x233   :  { %v1197_v57 = vpack.c.bf16 %v1181_v56, %v1181_v56  ;;  %v1292_v0 = vsel %vm1276_vm4, %v1196_v43, %v1260_v59 }
 0x234   :  { %v1125_v58 = vpop.f32.mrf.mxu0  ;;  %v1332_v4 = vunpack.c.l.b16 %v1292_v0 }
 0x235   :  { %v1213_v60 = vunpack.c.l.bf16 %v1197_v57  ;;  %v1144_v61 = vpack.c.bf16 %v1125_v58, %v1125_v58 }
 0x237   :  { %vm1229_vm3 = vcmp.gt.f32.partialorder %v1213_v60, 0.0  ;;  %v1245_v46 = vmul.f32 0.20019531, %v1213_v60  ;;  %v1165_v62 = vunpack.c.l.bf16 %v1144_v61 }
 0x238   :  { %vm1277_vm5 = vmpackc.low %vm1229_vm3, %vm1229_vm3 }
 0x239   :  { %v1261_v47 = vpack.c.bf16 %v1245_v46, %v1245_v46  ;;  %v1182_v63 = vadd.f32 %v2327_v45, %v1165_v62 }
 0x23b   :  { %v1198_v1 = vpack.c.bf16 %v1182_v63, %v1182_v63  ;;  %v1293_v2 = vsel %vm1277_vm5, %v1197_v57, %v1261_v47 }
 0x23c   :  { %v1127_v3 = vpop.f32.mrf.mxu0  ;;  %v1333_v5 = vunpack.c.l.b16 %v1293_v2 }
 0x23d   :  { %v1214_v6 = vunpack.c.l.bf16 %v1198_v1  ;;  %v1145_v7 = vpack.c.bf16 %v1127_v3, %v1127_v3 }
 0x23e   :  { %v1342_v8 = vpack.c.b16 %v1333_v5, %v1332_v4 }
 0x23f   :  { %v1166_v9 = vunpack.c.l.bf16 %v1145_v7  ;;  %v1246_v10 = vmul.f32 0.20019531, %v1214_v6  ;;  %vm1230_vm6 = vcmp.gt.f32.partialorder %v1214_v6, 0.0 }
 0x240   :  { %1910 = vmatmul.msk.bf16.gmra.mxu1 %vm1368_vm10, %v1342_v8  ;;  %vm1278_vm8 = vmpackc.low %vm1230_vm6, %vm1230_vm6 }
 0x241   :  { %v1183_v11 = vadd.f32 %v2327_v45, %v1166_v9  ;;  %v1262_v13 = vpack.c.bf16 %v1246_v10, %v1246_v10  ;;  %v1458_v45 = vld [vmem:[%s2415_s8] sm:$0x1] }
 0x242   :  { %v1460_v22 = vpack.i.b16 %v1458_v45, %v1458_v45 }
 0x243   :  { %v1199_v12 = vpack.c.bf16 %v1183_v11, %v1183_v11  ;;  %v1294_v16 = vsel %vm1278_vm8, %v1198_v1, %v1262_v13 }
 0x244   :  { %v1334_v19 = vunpack.c.l.b16 %v1294_v16  ;;  %v1462_v23 = vperm.slane %v1460_v22, 0 }
 0x245   :  { %v1215_v14 = vunpack.c.l.bf16 %v1199_v12 }
 0x246   :  { %v2356_v26 = vunpack.c.l.bf16 %v1462_v23 }
 0x247   :  { %vm1231_vm7 = vcmp.gt.f32.partialorder %v1215_v14, 0.0  ;;  %v1247_v15 = vmul.f32 0.20019531, %v1215_v14 }
 0x248   :  { %vm1279_vm9 = vmpackc.low %vm1231_vm7, %vm1231_vm7 }
 0x249   :  { %v1263_v17 = vpack.c.bf16 %v1247_v15, %v1247_v15 }
 0x24b   :  { %v1295_v18 = vsel %vm1279_vm9, %v1199_v12, %v1263_v17 }
 0x24c   :  { %v1335_v20 = vunpack.c.l.b16 %v1295_v18 }
 0x24e   :  { %v1343_v21 = vpack.c.b16 %v1335_v20, %v1334_v19 }
 0x250   :  { %1911 = vmatmul.msk.bf16.gmra.mxu1 %vm1368_vm10, %v1343_v21 }
 0x25d   :  { %v1402_v24 = vpop.f32.mrf.mxu1 }
 0x25e   :  { %v1442_v25 = vpack.c.bf16 %v1402_v24, %v1402_v24 }
 0x260   :  { %v1463_v27 = vunpack.c.l.bf16 %v1442_v25 }
 0x262   :  { %v1480_v28 = vadd.f32 %v2356_v26, %v1463_v27 }
 0x264   :  { %v1496_v30 = vpack.c.bf16 %v1480_v28, %v1480_v28 }
 0x265   :  { %v1404_v31 = vpop.f32.mrf.mxu1 }
 0x266   :  { %v1512_v32 = vunpack.c.l.bf16 %v1496_v30  ;;  %v1443_v33 = vpack.c.bf16 %v1404_v31, %v1404_v31 }
 0x268   :  { %v1464_v34 = vunpack.c.l.bf16 %v1443_v33  ;;  %v1544_v35 = vmul.f32 0.20019531, %v1512_v32  ;;  %vm1528_vm10 = vcmp.gt.f32.partialorder %v1512_v32, 0.0 }
 0x269   :  { %vm1576_vm12 = vmpackc.low %vm1528_vm10, %vm1528_vm10 }
 0x26a   :  { %v1481_v36 = vadd.f32 %v2356_v26, %v1464_v34  ;;  %v1560_v38 = vpack.c.bf16 %v1544_v35, %v1544_v35 }
 0x26c   :  { %v1497_v29 = vpack.c.bf16 %v1481_v36, %v1481_v36  ;;  %v1592_v48 = vsel %vm1576_vm12, %v1496_v30, %v1560_v38 }
 0x26d   :  { %v1407_v37 = vpop.f32.mrf.mxu1  ;;  %v1625_v52 = vunpack.c.l.b16 %v1592_v48 }
 0x26e   :  { %v1513_v39 = vunpack.c.l.bf16 %v1497_v29  ;;  %v1444_v40 = vpack.c.bf16 %v1407_v37, %v1407_v37 }
 0x270   :  { %vm1529_vm11 = vcmp.gt.f32.partialorder %v1513_v39, 0.0  ;;  %v1545_v41 = vmul.f32 0.20019531, %v1513_v39  ;;  %v1465_v42 = vunpack.c.l.bf16 %v1444_v40 }
 0x271   :  { %vm1577_vm13 = vmpackc.low %vm1529_vm11, %vm1529_vm11 }
 0x272   :  { %v1561_v43 = vpack.c.bf16 %v1545_v41, %v1545_v41  ;;  %v1482_v44 = vadd.f32 %v2356_v26, %v1465_v42 }
 0x274   :  { %v1498_v49 = vpack.c.bf16 %v1482_v44, %v1482_v44  ;;  %v1593_v50 = vsel %vm1577_vm13, %v1497_v29, %v1561_v43 }
 0x275   :  { %v1409_v51 = vpop.f32.mrf.mxu1  ;;  %v1626_v53 = vunpack.c.l.b16 %v1593_v50 }
 0x276   :  { %v1514_v54 = vunpack.c.l.bf16 %v1498_v49  ;;  %v1445_v55 = vpack.c.bf16 %v1409_v51, %v1409_v51 }
 0x277   :  { %v2361_v56 = vpack.c.b16 %v1626_v53, %v1625_v52 }
 0x278   :  { %v1466_v57 = vunpack.c.l.bf16 %v1445_v55  ;;  %v1546_v58 = vmul.f32 0.20019531, %v1514_v54  ;;  %vm1530_vm14 = vcmp.gt.f32.partialorder %v1514_v54, 0.0 }
 0x279   :  { %vm1578_vm1 = vmpackc.low %vm1530_vm14, %vm1530_vm14 }
 0x27a   :  { %v1483_v59 = vadd.f32 %v2356_v26, %v1466_v57  ;;  %v1562_v46 = vpack.c.bf16 %v1546_v58, %v1546_v58 }
 0x27c   :  { %v1499_v60 = vpack.c.bf16 %v1483_v59, %v1483_v59  ;;  %v1594_v3 = vsel %vm1578_vm1, %v1498_v49, %v1562_v46 }
 0x27d   :  { %v1412_v61 = vpop.f32.mrf.mxu1  ;;  %v1627_v7 = vunpack.c.l.b16 %v1594_v3 }
 0x27e   :  { %v1515_v62 = vunpack.c.l.bf16 %v1499_v60  ;;  %v1446_v47 = vpack.c.bf16 %v1412_v61, %v1412_v61 }
 0x280   :  { %vm1531_vm15 = vcmp.gt.f32.partialorder %v1515_v62, 0.0  ;;  %v1547_v63 = vmul.f32 0.20019531, %v1515_v62  ;;  %v1467_v0 = vunpack.c.l.bf16 %v1446_v47 }
 0x281   :  { %vm1579_vm2 = vmpackc.low %vm1531_vm15, %vm1531_vm15 }
 0x282   :  { %v1563_v1 = vpack.c.bf16 %v1547_v63, %v1547_v63  ;;  %v1484_v2 = vadd.f32 %v2356_v26, %v1467_v0 }
 0x284   :  { %v1500_v4 = vpack.c.bf16 %v1484_v2, %v1484_v2  ;;  %v1595_v5 = vsel %vm1579_vm2, %v1499_v60, %v1563_v1 }
 0x285   :  { %v1414_v6 = vpop.f32.mrf.mxu1  ;;  %v1628_v8 = vunpack.c.l.b16 %v1595_v5 }
 0x286   :  { %v1516_v9 = vunpack.c.l.bf16 %v1500_v4  ;;  %v1447_v10 = vpack.c.bf16 %v1414_v6, %v1414_v6 }
 0x287   :  { %v2365_v11 = vpack.c.b16 %v1628_v8, %v1627_v7 }
 0x288   :  { %v1468_v12 = vunpack.c.l.bf16 %v1447_v10  ;;  %v1548_v13 = vmul.f32 0.20019531, %v1516_v9  ;;  %vm1532_vm3 = vcmp.gt.f32.partialorder %v1516_v9, 0.0 }
 0x289   :  { %vm1580_vm5 = vmpackc.low %vm1532_vm3, %vm1532_vm3 }
 0x28a   :  { %v1485_v14 = vadd.f32 %v2356_v26, %v1468_v12  ;;  %v1564_v17 = vpack.c.bf16 %v1548_v13, %v1548_v13 }
 0x28c   :  { %v1501_v15 = vpack.c.bf16 %v1485_v14, %v1485_v14  ;;  %v1596_v23 = vsel %vm1580_vm5, %v1500_v4, %v1564_v17 }
 0x28d   :  { %v1417_v16 = vpop.f32.mrf.mxu1  ;;  %v1629_v28 = vunpack.c.l.b16 %v1596_v23 }
 0x28e   :  { %v1517_v18 = vunpack.c.l.bf16 %v1501_v15  ;;  %v1448_v19 = vpack.c.bf16 %v1417_v16, %v1417_v16 }
 0x290   :  { %vm1533_vm4 = vcmp.gt.f32.partialorder %v1517_v18, 0.0  ;;  %v1549_v20 = vmul.f32 0.20019531, %v1517_v18  ;;  %v1469_v21 = vunpack.c.l.bf16 %v1448_v19 }
 0x291   :  { %vm1581_vm6 = vmpackc.low %vm1533_vm4, %vm1533_vm4 }
 0x292   :  { %v1565_v45 = vpack.c.bf16 %v1549_v20, %v1549_v20  ;;  %v1486_v22 = vadd.f32 %v2356_v26, %v1469_v21 }
 0x294   :  { %v1502_v24 = vpack.c.bf16 %v1486_v22, %v1486_v22  ;;  %v1597_v25 = vsel %vm1581_vm6, %v1501_v15, %v1565_v45 }
 0x295   :  { %v1419_v27 = vpop.f32.mrf.mxu1  ;;  %v1630_v30 = vunpack.c.l.b16 %v1597_v25 }
 0x296   :  { %v1518_v31 = vunpack.c.l.bf16 %v1502_v24  ;;  %v1449_v32 = vpack.c.bf16 %v1419_v27, %v1419_v27 }
 0x297   :  { %v2369_v33 = vpack.c.b16 %v1630_v30, %v1629_v28 }
 0x298   :  { %v1470_v34 = vunpack.c.l.bf16 %v1449_v32  ;;  %v1550_v35 = vmul.f32 0.20019531, %v1518_v31  ;;  %vm1534_vm7 = vcmp.gt.f32.partialorder %v1518_v31, 0.0 }
 0x299   :  { %vm1582_vm9 = vmpackc.low %vm1534_vm7, %vm1534_vm7 }
 0x29a   :  { %v1487_v36 = vadd.f32 %v2356_v26, %v1470_v34  ;;  %v1566_v38 = vpack.c.bf16 %v1550_v35, %v1550_v35 }
 0x29c   :  { %v1503_v29 = vpack.c.bf16 %v1487_v36, %v1487_v36  ;;  %v1598_v48 = vsel %vm1582_vm9, %v1502_v24, %v1566_v38 }
 0x29d   :  { %v1422_v37 = vpop.f32.mrf.mxu1  ;;  %v1631_v52 = vunpack.c.l.b16 %v1598_v48 }
 0x29e   :  { %v1519_v39 = vunpack.c.l.bf16 %v1503_v29  ;;  %v1450_v40 = vpack.c.bf16 %v1422_v37, %v1422_v37 }
 0x2a0   :  { %vm1535_vm8 = vcmp.gt.f32.partialorder %v1519_v39, 0.0  ;;  %v1551_v41 = vmul.f32 0.20019531, %v1519_v39  ;;  %v1471_v42 = vunpack.c.l.bf16 %v1450_v40 }
 0x2a1   :  { %vm1583_vm10 = vmpackc.low %vm1535_vm8, %vm1535_vm8 }
 0x2a2   :  { %v1567_v43 = vpack.c.bf16 %v1551_v41, %v1551_v41  ;;  %v1488_v44 = vadd.f32 %v2356_v26, %v1471_v42 }
 0x2a4   :  { %v1504_v49 = vpack.c.bf16 %v1488_v44, %v1488_v44  ;;  %v1599_v50 = vsel %vm1583_vm10, %v1503_v29, %v1567_v43 }
 0x2a5   :  { %v1424_v51 = vpop.f32.mrf.mxu1  ;;  %v1632_v53 = vunpack.c.l.b16 %v1599_v50 }
 0x2a6   :  { %v1520_v54 = vunpack.c.l.bf16 %v1504_v49  ;;  %v1451_v55 = vpack.c.bf16 %v1424_v51, %v1424_v51 }
 0x2a7   :  { %v2373_v57 = vpack.c.b16 %v1632_v53, %v1631_v52 }
 0x2a8   :  { %v1472_v58 = vunpack.c.l.bf16 %v1451_v55  ;;  %v1552_v59 = vmul.f32 0.20019531, %v1520_v54  ;;  %vm1536_vm11 = vcmp.gt.f32.partialorder %v1520_v54, 0.0 }
 0x2a9   :  { %vm1584_vm13 = vmpackc.low %vm1536_vm11, %vm1536_vm11 }
 0x2aa   :  { %v1489_v60 = vadd.f32 %v2356_v26, %v1472_v58  ;;  %v1568_v62 = vpack.c.bf16 %v1552_v59, %v1552_v59 }
 0x2ac   :  { %v1505_v61 = vpack.c.bf16 %v1489_v60, %v1489_v60  ;;  %v1600_v1 = vsel %vm1584_vm13, %v1504_v49, %v1568_v62 }
 0x2ad   :  { %v1427_v46 = vpop.f32.mrf.mxu1  ;;  %v1633_v4 = vunpack.c.l.b16 %v1600_v1 }
 0x2ae   :  { %v1521_v47 = vunpack.c.l.bf16 %v1505_v61  ;;  %v1452_v20 = vpack.c.bf16 %v1427_v46, %v1427_v46 }
 0x2b0   :  { %vm1537_vm12 = vcmp.gt.f32.partialorder %v1521_v47, 0.0  ;;  %v1553_v63 = vmul.f32 0.20019531, %v1521_v47  ;;  %v1473_v28 = vunpack.c.l.bf16 %v1452_v20 }
 0x2b1   :  { %vm1585_vm14 = vmpackc.low %vm1537_vm12, %vm1537_vm12 }
 0x2b2   :  { %v1569_v0 = vpack.c.bf16 %v1553_v63, %v1553_v63  ;;  %v1490_v29 = vadd.f32 %v2356_v26, %v1473_v28 }
 0x2b4   :  { %v1601_v2 = vsel %vm1585_vm14, %v1505_v61, %v1569_v0  ;;  %v1506_v43 = vpack.c.bf16 %v1490_v29, %v1490_v29 }
 0x2b5   :  { %v1429_v3 = vpop.f32.mrf.mxu1  ;;  %v1634_v5 = vunpack.c.l.b16 %v1601_v2 }
 0x2b6   :  { %v1453_v17 = vpack.c.bf16 %v1429_v3, %v1429_v3  ;;  %v1522_v53 = vunpack.c.l.bf16 %v1506_v43 }
 0x2b7   :  { %v2376_v6 = vpack.c.b16 %v1634_v5, %v1633_v4 }
 0x2b8   :  { %v1474_v22 = vunpack.c.l.bf16 %v1453_v17  ;;  %v1554_v46 = vmul.f32 0.20019531, %v1522_v53  ;;  %vm1538_vm9 = vcmp.gt.f32.partialorder %v1522_v53, 0.0  ;;  %v1653_v17 = vsel %vm121_vm0, %v2361_v56, 0 }
 0x2b9   :  { %vm1586_vm11 = vmpackc.low %vm1538_vm9, %vm1538_vm9 }
 0x2ba   :  { %v1491_v32 = vadd.f32 %v2356_v26, %v1474_v22  ;;  %v1570_v2 = vpack.c.bf16 %v1554_v46, %v1554_v46 }
 0x2bc   :  { %v1507_v39 = vpack.c.bf16 %v1491_v32, %v1491_v32  ;;  %v1602_v5 = vsel %vm1586_vm11, %v1506_v43, %v1570_v2 }
 0x2bd   :  { %v1432_v7 = vpop.f32.mrf.mxu1 }
 0x2be   :  { %v1454_v10 = vpack.c.bf16 %v1432_v7, %v1432_v7  ;;  %v1523_v49 = vunpack.c.l.bf16 %v1507_v39 }
 0x2c0   :  { %v1475_v15 = vunpack.c.l.bf16 %v1454_v10  ;;  %v1555_v59 = vmul.f32 0.20019531, %v1523_v49  ;;  %vm1539_vm8 = vcmp.gt.f32.partialorder %v1523_v49, 0.0 }
 0x2c1   :  { %vm1587_vm10 = vmpackc.low %vm1539_vm8, %vm1539_vm8 }
 0x2c2   :  { %v1492_v21 = vadd.f32 %v2356_v26, %v1475_v15  ;;  %v1571_v0 = vpack.c.bf16 %v1555_v59, %v1555_v59  ;;  %v1659_v15 = vsel %vm121_vm0, %v2369_v33, 0 }
 0x2c4   :  { %v1508_v30 = vpack.c.bf16 %v1492_v21, %v1492_v21  ;;  %v1603_v4 = vsel %vm1587_vm10, %v1507_v39, %v1571_v0 }
 0x2c5   :  { %v1434_v8 = vpop.f32.mrf.mxu1 }
 0x2c6   :  { %v1455_v9 = vpack.c.bf16 %v1434_v8, %v1434_v8  ;;  %v1524_v37 = vunpack.c.l.bf16 %v1508_v30  ;;  %v1636_v8 = vunpack.c.l.b16 %v1603_v4 }
 0x2c8   :  { %v1476_v13 = vunpack.c.l.bf16 %v1455_v9  ;;  %v1556_v44 = vmul.f32 0.20019531, %v1524_v37  ;;  %vm1540_vm5 = vcmp.gt.f32.partialorder %v1524_v37, 0.0  ;;  %v1635_v9 = vunpack.c.l.b16 %v1602_v5 }
 0x2c9   :  { %vm1588_vm7 = vmpackc.low %vm1540_vm5, %vm1540_vm5 }
 0x2ca   :  { %v1493_v18 = vadd.f32 %v2356_v26, %v1476_v13  ;;  %v1646_v10 = vpack.c.b16 %v1636_v8, %v1635_v9  ;;  %v1665_v13 = vsel %vm121_vm0, %v2376_v6, 0  ;;  %v1608_v6 = vld [vmem:[%s2416_s9] sm:$0xf]  ;;  %s1989_s9 = smov [#allocation3]  }
 0x2cb   :  { %s1717_s24 = sshll.u32 %s1989_s9, 4  ;;  %s1718_s24 = int_to_ptr.vmem [resolvable:$true] %s1717_s24 }
 0x2cc   :  { %v1509_v24 = vpack.c.bf16 %v1493_v18, %v1493_v18 }
 0x2cd   :  { %v1437_v12 = vpop.f32.mrf.mxu1 }
 0x2ce   :  { %v1456_v14 = vpack.c.bf16 %v1437_v12, %v1437_v12  ;;  %v1525_v34 = vunpack.c.l.bf16 %v1509_v24  ;;  %v1668_v12 = vsel %vm121_vm0, %v1646_v10, 0 }
 0x2d0   :  { %v1477_v16 = vunpack.c.l.bf16 %v1456_v14  ;;  %v1557_v40 = vmul.f32 0.20019531, %v1525_v34  ;;  %vm1541_vm3 = vcmp.gt.f32.partialorder %v1525_v34, 0.0  ;;  %v1662_v14 = vsel %vm121_vm0, %v2373_v57, 0 }
 0x2d1   :  { %vm1589_vm6 = vmpackc.low %vm1541_vm3, %vm1541_vm3  ;;  %v1690_v57 = vstv %s2417_s10  ;;  %s1719_s10 = sshll.u32 %s2418_s11, 4  ;;  %s1720_s10 = int_to_ptr.hbm [resolvable:$true] %s1719_s10 }
 0x2d2   :  { %v1494_v19 = vadd.f32 %v2356_v26, %v1477_v16  ;;  %v1573_v50 = vpack.c.bf16 %v1557_v40, %v1557_v40  ;;  %v1656_v16 = vsel %vm121_vm0, %v2365_v11, 0 }
 0x2d4   :  { %v1510_v45 = vpack.c.bf16 %v1494_v19, %v1494_v19  ;;  %v1605_v60 = vsel %vm1589_vm6, %v1509_v24, %v1573_v50 }
 0x2d5   :  { %v1439_v23 = vpop.f32.mrf.mxu1  ;;  %v1638_v63 = vunpack.c.l.b16 %v1605_v60 }
 0x2d6   :  { %v1526_v25 = vunpack.c.l.bf16 %v1510_v45  ;;  %v1457_v27 = vpack.c.bf16 %v1439_v23, %v1439_v23 }
 0x2d8   :  { %v1478_v31 = vunpack.c.l.bf16 %v1457_v27  ;;  %v1558_v35 = vmul.f32 0.20019531, %v1526_v25  ;;  %vm1542_vm15 = vcmp.gt.f32.partialorder %v1526_v25, 0.0 }
 0x2d9   :  { %vm1590_vm2 = vmpackc.low %vm1542_vm15, %vm1542_vm15 }
 0x2da   :  { %v1495_v36 = vadd.f32 %v2356_v26, %v1478_v31  ;;  %v1574_v41 = vpack.c.bf16 %v1558_v35, %v1558_v35  ;;  %v1572_v26 = vpack.c.bf16 %v1556_v44, %v1556_v44 }
 0x2dc   :  { %v1511_v38 = vpack.c.bf16 %v1495_v36, %v1495_v36  ;;  %v1606_v52 = vsel %vm1590_vm2, %v1510_v45, %v1574_v41  ;;  %v1604_v62 = vsel %vm1588_vm7, %v1508_v30, %v1572_v26 }
 0x2dd   :  { %v1639_v55 = vunpack.c.l.b16 %v1606_v52  ;;  %v1637_v1 = vunpack.c.l.b16 %v1604_v62 }
 0x2de   :  { %v1527_v42 = vunpack.c.l.bf16 %v1511_v38 }
 0x2df   :  { %v1647_v3 = vpack.c.b16 %v1638_v63, %v1637_v1 }
 0x2e0   :  { %vm1543_vm1 = vcmp.gt.f32.partialorder %v1527_v42, 0.0  ;;  %v1559_v48 = vmul.f32 0.20019531, %v1527_v42 }
 0x2e1   :  { %vm1591_vm4 = vmpackc.low %vm1543_vm1, %vm1543_vm1  ;;  %v1671_v7 = vsel %vm121_vm0, %v1647_v3, 0 }
 0x2e2   :  { %v1575_v51 = vpack.c.bf16 %v1559_v48, %v1559_v48 }
 0x2e4   :  { %v1607_v54 = vsel %vm1591_vm4, %v1511_v38, %v1575_v51 }
 0x2e5   :  { %v1640_v58 = vunpack.c.l.b16 %v1607_v54 }
 0x2e7   :  { %v1648_v61 = vpack.c.b16 %v1640_v58, %v1639_v55 }
 0x2e9   :  { %v1674_v47 = vsel %vm121_vm0, %v1648_v61, 0 }
 0x2ea   :  { %1676 = vmatpush.bf16.xpose.msra.mxu2 %v1674_v47 }
 0x2f2   :  { %1677 = vmatpush.bf16.xpose.msra.mxu2 %v1671_v7 }
 0x2fa   :  { %1678 = vmatpush.bf16.xpose.msra.mxu2 %v1668_v12 }
 0x302   :  { %1679 = vmatpush.bf16.xpose.msra.mxu2 %v1665_v13 }
 0x30a   :  { %1680 = vmatpush.bf16.xpose.msra.mxu2 %v1662_v14 }
 0x312   :  { %1681 = vmatpush.bf16.xpose.msra.mxu2 %v1659_v15 }
 0x31a   :  { %1682 = vmatpush.bf16.xpose.msra.mxu2 %v1656_v16 }
 0x322   :  { %1683 = vmatpush.bf16.xpose.msra.mxu2 %v1653_v17 }
 0x329   :  { %1912 = vmatmul.msk.bf16.vlgmr.msra.gmra.mxu2 %vm121_vm0, %v1608_v6 }
 0x3ac   :  { %v1685_v33 = vpop.f32.mrf.mxu2 }
 0x3ad   :  { %v1691_v18 = vadd.f32 %v1690_v57, %v1685_v33 }
 0x3af   :  { %v1913_v19 = vmul.f32 -1.442695, %v1691_v18 }
 0x3b1   :  { %1959 = vpow2.f32 %v1913_v19 }
 0x3b4   :  { %v1687_v11 = vpop.f32.mrf.mxu2 }
 0x3b7   :  { %v1960_v20 = vpop.eup %1959 }
 0x3b8   :  { %v1695_v21 = vadd.f32 1.0, %v1960_v20 }
 0x3ba   :  { %1961 = vrcp.f32 %v1695_v21  ;;  %v1707_v23 = vand.u32 2147483648, %v1695_v21  ;;  %v1705_v25 = vand.u32 2147483647, %v1695_v21  ;;  %vm1701_vm0 = vweird.f32 %v1695_v21 }
 0x3bc   :  { %v1708_v28 = vor.u32 1.1754944e-38, %v1707_v23  ;;  %vm1706_vm14 = vcmp.eq.f32.partialorder %v1705_v25, 8.507059e+37 }
 0x3c0   :  { %v1962_v56 = vpop.eup %1961 }
 0x3c1   :  { %v1697_v45 = vmul.f32 %v1962_v56, %v1695_v21  ;;  %vm1702_vm12 = vweird.f32 %v1962_v56 }
 0x3c2   :  { %vm1703_vm13 = vmor %vm1701_vm0, %vm1702_vm12 }
 0x3c3   :  { %v1698_v22 = vsub.f32 1.0, %v1697_v45 }
 0x3c5   :  { %v1699_v24 = vmul.f32 %v1962_v56, %v1698_v22 }
 0x3c7   :  { %v1700_v27 = vadd.f32 %v1962_v56, %v1699_v24 }
 0x3c9   :  { %v1704_v30 = vsel %vm1703_vm13, %v1962_v56, %v1700_v27 }
 0x3ca   :  { %v1709_v31 = vsel %vm1706_vm14, %v1708_v28, %v1704_v30 }
 0x3cb   :  { %1711 = vst [vmem:[#allocation3] sm:$0x1] %v1709_v31 }
 0x3cc   :  { %1722 = dma.vmem_to_hbm [thread:$0]  %s1718_s24, 16, %s1720_s10, [#allocation4]  }
 0x3cd   :  { %1987 = dma.done.wait [#allocation4], 16  }
 0x3ce   :  { %1988 = vsyncadd [#allocation4], 4294967280 }
 0x3cf   :  { %1727 = vsyncpa [#allocation4], 1 }

</bundles_post_ra>
